<compile_context>
chip_gen: v7x
topology: tpu7x:2x2x1
jax: 0.10.0
libtpu: 0.0.40
codegen_flags: <defaults>
</compile_context>

<pallas_src>
import functools

import jax
import jax.numpy as jnp
from jax.experimental import pallas as pl
from jax.experimental.pallas import tpu as pltpu

NON_JOINTS_NUM = 2  # stand-in for cfg.TRAIN.non_joints_num (config value)


def _round_up(x, m):
    return ((x + m - 1) // m) * m


def _vmem_limit_bytes(frac=0.7):
    """Generation-aware scoped-VMEM budget (v5e/v6e: 128 MiB, v7x: 64 MiB/TC)."""
    try:
        cap = getattr(pltpu.get_tpu_info(), "vmem_capacity_bytes", 0)
        if cap:
            return int(frac * cap)
    except Exception:
        pass
    return 48 * 1024 * 1024  # safe static fallback


# ----------------------------------------------------------------------------
# Pallas kernel: one anchor-row tile of the SupConLoss forward.
#   inputs : per-block anchor labels [TM,1] i32, full labels [1,Np] i32,
#            contrast feature slab [Np,Dp] (f32 or bf16; anchors sliced from it)
#   outputs: per-block (8,128) tiles holding the block's loss-sum and
#            valid-row-count (block-local scalars broadcast; lane-aligned).
# ----------------------------------------------------------------------------
def _supcon_kernel(lbl_row_ref, lbl_col_ref, contrast_ref, psum_ref, pcnt_ref, *,
                   inv_temperature, loss_scale, block_rows):
    i = pl.program_id(0)
    tm = block_rows
    np_ = lbl_col_ref.shape[1]

    lbl_row = lbl_row_ref[...]                       # [TM, 1] int32 (-1 = padding)
    lbl_col = lbl_col_ref[...]                       # [1, Np] int32 (-1 = padding)

    # Anchor tile sliced from the resident contrast slab (no separate anchor
    # input / DMA); 1/temperature folded into the anchor (O(TM*D), not O(TM*N)).
    row0 = pl.multiple_of(i * block_rows, block_rows)
    a = contrast_ref[pl.ds(row0, block_rows), :]                       # [TM, Dp]
    a = (a.astype(jnp.float32) * jnp.float32(inv_temperature)).astype(contrast_ref.dtype)
    c = contrast_ref[...]                                              # [Np, Dp]

    # logits[r, k] = <anchor_r, contrast_k> / T.  Contract both operands on the
    # last (lane) dim — no materialized transpose; MXU accumulates in f32.
    logits = jax.lax.dot_general(
        a, c, dimension_numbers=(((1,), (1,)), ((), ())),
        preferred_element_type=jnp.float32)                            # [TM, Np] f32

    # Masks from broadcast compares of (TM,1) x (1,Np) operands — no [TM,Np]
    # int32 intermediates.
    row_id = jax.lax.broadcasted_iota(jnp.int32, (tm, 1), 0) + i * block_rows
    col_id = jax.lax.broadcasted_iota(jnp.int32, (1, np_), 1)
    col_valid = lbl_col >= 0                                           # [1, Np]
    row_valid = lbl_row >= 0                                           # [TM, 1]
    lmask = jnp.logical_and(row_id != col_id, col_valid)               # [TM, Np]
    pmask = jnp.logical_and(jnp.logical_and(lbl_row == lbl_col, row_valid), lmask)

    # Fold lmask into the logits once; the subtracted row max cancels exactly
    # in the final loss and masked entries underflow to 0 under exp.
    masked = jnp.where(lmask, logits, jnp.float32(-1e30))
    row_max = jnp.max(masked, axis=1, keepdims=True)
    shifted = masked - row_max
    denom = jnp.sum(jnp.exp(shifted), axis=1, keepdims=True)           # [TM, 1], >= 1

    pos_sum = jnp.sum(jnp.where(pmask, shifted, 0.0), axis=1, keepdims=True)
    pos_cnt = jnp.sum(pmask.astype(jnp.float32), axis=1, keepdims=True)

    has_pos = pos_cnt > 0.0
    # Exact f32 divide on a [TM,1] vector (essentially free) for bit-closeness
    # to the PyTorch reference.
    mean_log_prob_pos = pos_sum / jnp.maximum(pos_cnt, 1.0) - jnp.log(denom)
    per_row_loss = jnp.float32(loss_scale) * mean_log_prob_pos         # -(T/base_T)*mlpp

    row_ok = jnp.logical_and(row_valid, has_pos).astype(jnp.float32)   # [TM, 1]
    partial_sum = jnp.sum(per_row_loss * row_ok)
    partial_cnt = jnp.sum(row_ok)

    # Lane-aligned (8,128) per-block partial tiles (block scalars broadcast).
    psum_ref[...] = jnp.full(psum_ref.shape, partial_sum, dtype=jnp.float32)
    pcnt_ref[...] = jnp.full(pcnt_ref.shape, partial_cnt, dtype=jnp.float32)


# ----------------------------------------------------------------------------
# SupConLoss wrapper: padding + label plumbing only; all N^2 math in-kernel.
# ----------------------------------------------------------------------------
def supcon_loss_pallas(features, labels, temperature=0.07, base_temperature=0.07,
                       use_bf16_matmul=False):
    """features: [bsz, n_view, D] float32, labels: [bsz] int. Returns scalar loss."""
    bsz, n_view, D = features.shape
    N = bsz * n_view
    # torch.cat(torch.unbind(features, dim=1), dim=0)  ==  view-major flatten.
    contrast = jnp.swapaxes(features, 0, 1).reshape(N, D).astype(jnp.float32)
    labels_flat = jnp.tile(labels.astype(jnp.int32).reshape(-1), (n_view,))   # [N]

    # TPU-friendly padding; padded rows/cols carry label -1 (excluded in-kernel).
    Dp = max(_round_up(D, 128), 128)
    Np0 = max(_round_up(N, 128), 128)
    # TM=128: the binding resource is the live [TM, Np] temporaries streamed
    # through VPU/EUP/XLU, not MXU M-utilization; also yields more grid steps.
    TM = 128
    # Even number of row blocks so the "parallel" axis splits evenly across
    # v7x's two TensorCores (extra padded rows carry label -1 and are skipped).
    Np = Np0 if Np0 <= TM else _round_up(Np0, 2 * TM)
    G = Np // TM

    feat_p = jnp.zeros((Np, Dp), jnp.float32).at[:N, :D].set(contrast)
    if use_bf16_matmul:
        # Cast ONCE in the wrapper (not per grid step): halves slab DMA bytes
        # and VMEM residency.  Works on v5e/v6e/v7x; softmax math stays f32.
        feat_p = feat_p.astype(jnp.bfloat16)
    lbl_p = jnp.full((Np,), -1, jnp.int32).at[:N].set(labels_flat)
    lbl_row = lbl_p.reshape(Np, 1)
    lbl_col = lbl_p.reshape(1, Np)

    kernel = functools.partial(
        _supcon_kernel,
        inv_temperature=1.0 / temperature,
        loss_scale=-(temperature / base_temperature),
        block_rows=TM)

    grid_spec = pltpu.PrefetchScalarGridSpec(
        num_scalar_prefetch=0,
        grid=(G,),
        in_specs=[
            pl.BlockSpec((TM, 1), lambda i: (i, 0)),    # anchor-block labels
            pl.BlockSpec((1, Np), lambda i: (0, 0)),    # full contrast labels
            pl.BlockSpec((Np, Dp), lambda i: (0, 0)),   # contrast slab (anchors sliced in-kernel)
        ],
        out_specs=[
            pl.BlockSpec((8, 128), lambda i: (i, 0)),   # per-block loss sums
            pl.BlockSpec((8, 128), lambda i: (i, 0)),   # per-block valid-row counts
        ],
    )

    psum, pcnt = pl.pallas_call(
        kernel,
        out_shape=(jax.ShapeDtypeStruct((G * 8, 128), jnp.float32),
                   jax.ShapeDtypeStruct((G * 8, 128), jnp.float32)),
        grid_spec=grid_spec,
        compiler_params=pltpu.CompilerParams(
            # independent row blocks -> shard across v7x's two TensorCores
            dimension_semantics=("parallel",),
            vmem_limit_bytes=_vmem_limit_bytes()),
    )(lbl_row, lbl_col, feat_p)

    total = jnp.sum(psum.reshape(G, 8, 128)[:, 0, 0])
    count = jnp.sum(pcnt.reshape(G, 8, 128)[:, 0, 0])
    return total / count


# ----------------------------------------------------------------------------
# JointContrastiveLoss forward
# ----------------------------------------------------------------------------
def joint_contrastive_loss(output, target, temperature=0.5, use_bf16_matmul=False):
    """output: [B, J, V, D], target: [B, J] int (0 = invalid joint)."""
    # NOTE: like the PyTorch module, `temperature` of JointContrastiveLoss is
    # unused by the criterion (SupConLoss uses its own default 0.07).
    B, J, V, D = output.shape
    labels = jnp.tile(jnp.arange(J, dtype=jnp.int32)[None, :], (B, 1))
    labels = labels.at[:, -NON_JOINTS_NUM:].set(J - NON_JOINTS_NUM)
    output = output.reshape(B * J, V, D)
    target = target.reshape(B * J)
    labels = labels.reshape(B * J)
    valid = target != 0
    # TODO(synk): data-dependent filtering -> dynamic shape; done eagerly in the
    # wrapper (outside jit / outside the kernel), as in the PyTorch module.
    output = output[valid]
    labels = labels[valid]
    return supcon_loss_pallas(output, labels, use_bf16_matmul=use_bf16_matmul)


# ----------------------------------------------------------------------------
# Pure-JAX reference (mirrors the PyTorch SupConLoss exactly) for validation
# ----------------------------------------------------------------------------
def _supcon_loss_ref(features, labels, temperature=0.07, base_temperature=0.07):
    bsz, n_view, D = features.shape
    N = bsz * n_view
    contrast = jnp.concatenate([features[:, v, :] for v in range(n_view)], axis=0)
    logits = contrast @ contrast.T / temperature
    logits = logits - jnp.max(logits, axis=1, keepdims=True)
    eq = (labels[:, None] == labels[None, :]).astype(jnp.float32)
    mask = jnp.tile(eq, (n_view, n_view))
    lmask = 1.0 - jnp.eye(N, dtype=jnp.float32)
    mask = mask * lmask
    exp_logits = jnp.exp(logits) * lmask
    log_prob = logits - jnp.log(exp_logits.sum(1, keepdims=True))
    mlpp = (mask * log_prob).sum(1) / mask.sum(1)
    return jnp.mean(-(temperature / base_temperature) * mlpp)


def _joint_loss_ref(output, target):
    B, J, V, D = output.shape
    labels = jnp.tile(jnp.arange(J, dtype=jnp.int32)[None, :], (B, 1))
    labels = labels.at[:, -NON_JOINTS_NUM:].set(J - NON_JOINTS_NUM)
    output = output.reshape(B * J, V, D)
    target = target.reshape(B * J)
    labels = labels.reshape(B * J)
    valid = target != 0
    return _supcon_loss_ref(output[valid], labels[valid])


if __name__ == "__main__":
    key = jax.random.PRNGKey(0)
    B, J, V, D = 2, 8, 2, 32
    k1, k2 = jax.random.split(key)
    output = jax.random.normal(k1, (B, J, V, D), dtype=jnp.float32)
    # normalize features (typical upstream behavior; keeps exp() well-conditioned)
    output = output / jnp.linalg.norm(output, axis=-1, keepdims=True)
    target = jax.random.randint(k2, (B, J), 0, 3).astype(jnp.int32)
    target = target.at[0, :4].set(1)  # guarantee a few valid joints

    ref = _joint_loss_ref(output, target)
    jax.block_until_ready(ref)

    # f32-MXU path: exact f32 softmax math, exact divide for positive counts.
    loss = joint_contrastive_loss(output, target)
    jax.block_until_ready(loss)
    assert jnp.isfinite(loss), "loss is not finite"
    assert jnp.allclose(loss, ref, rtol=1e-2, atol=1e-2), (loss, ref)

    # bf16-MXU path (bf16-native MXU on v5e/v6e/v7x); looser tolerance for bf16 logits.
    loss_bf16 = joint_contrastive_loss(output, target, use_bf16_matmul=True)
    jax.block_until_ready(loss_bf16)
    assert jnp.isfinite(loss_bf16), "bf16 loss is not finite"
    assert jnp.allclose(loss_bf16, ref, rtol=5e-2, atol=5e-2), (loss_bf16, ref)

    print("KERNEL_OK")
</pallas_src>

<mosaic_0001>
module attributes {stable_mosaic.version = 11 : i64} {
  func.func @_supcon_kernel(%arg0: i32, %arg1: memref<128x1xi32, #tpu.memory_space<vmem>>, %arg2: memref<1x128xi32, #tpu.memory_space<vmem>>, %arg3: memref<128x128xf32, #tpu.memory_space<vmem>>, %arg4: memref<8x128xf32, #tpu.memory_space<vmem>>, %arg5: memref<8x128xf32, #tpu.memory_space<vmem>>) attributes {dimension_semantics = [#tpu.dimension_semantics<parallel>], iteration_bounds = array<i64: 1>, scalar_prefetch = 0 : i64, scratch_operands = 0 : i64, tpu.core_type = #tpu.core_type<tc>, window_params = [{transform_indices = @transform_0, window_bounds = array<i64: 128, 1>}, {pipeline_mode = #tpu.pipeline_mode<synchronous>, transform_indices = @transform_1, window_bounds = array<i64: 1, 128>}, {pipeline_mode = #tpu.pipeline_mode<synchronous>, transform_indices = @transform_2, window_bounds = array<i64: 128, 128>}, {transform_indices = @transform_3, window_bounds = array<i64: 8, 128>}, {transform_indices = @transform_4, window_bounds = array<i64: 8, 128>}]} {
    %c0 = arith.constant 0 : index
    %c0_0 = arith.constant 0 : index
    %0 = vector.load %arg1[%c0, %c0_0] : memref<128x1xi32, #tpu.memory_space<vmem>>, vector<128x1xi32>
    %c0_1 = arith.constant 0 : index
    %c0_2 = arith.constant 0 : index
    %1 = vector.load %arg2[%c0_1, %c0_2] : memref<1x128xi32, #tpu.memory_space<vmem>>, vector<1x128xi32>
    %c128_i32 = arith.constant 128 : i32
    %2 = arith.muli %arg0, %c128_i32 : i32
    %3 = tpu.assume_multiple %2, 128 : i32
    %4 = arith.index_cast %3 : i32 to index
    %c0_3 = arith.constant 0 : index
    %5 = vector.load %arg3[%4, %c0_3] : memref<128x128xf32, #tpu.memory_space<vmem>>, vector<128x128xf32>
    %cst = arith.constant 14.2857141 : f32
    %6 = vector.broadcast %cst : f32 to vector<128x128xf32>
    %7 = arith.mulf %5, %6 : vector<128x128xf32>
    %c0_4 = arith.constant 0 : index
    %c0_5 = arith.constant 0 : index
    %8 = vector.load %arg3[%c0_4, %c0_5] : memref<128x128xf32, #tpu.memory_space<vmem>>, vector<128x128xf32>
    %cst_6 = arith.constant dense<0.000000e+00> : vector<128x128xf32>
    %9 = tpu.matmul %7, %8, %cst_6 {dimension_numbers = #tpu.dot_dimension_numbers<[1], [1], [0], [0], [0, 0, 1, 0], [], []>} : vector<128x128xf32>, vector<128x128xf32>, vector<128x128xf32> -> vector<128x128xf32>
    %10 = tpu.iota {dimensions = array<i32: 0>} : vector<128x1xi32>
    %c128_i32_7 = arith.constant 128 : i32
    %11 = arith.muli %arg0, %c128_i32_7 : i32
    %12 = vector.broadcast %11 : i32 to vector<128x1xi32>
    %13 = arith.addi %10, %12 : vector<128x1xi32>
    %14 = tpu.iota {dimensions = array<i32: 1>} : vector<1x128xi32>
    %c0_i32 = arith.constant 0 : i32
    %15 = vector.broadcast %c0_i32 : i32 to vector<1x128xi32>
    %16 = arith.cmpi sge, %1, %15 : vector<1x128xi32>
    %c0_i32_8 = arith.constant 0 : i32
    %17 = vector.broadcast %c0_i32_8 : i32 to vector<128x1xi32>
    %18 = arith.cmpi sge, %0, %17 : vector<128x1xi32>
    %19 = vector.broadcast %13 : vector<128x1xi32> to vector<128x128xi32>
    %20 = vector.broadcast %14 : vector<1x128xi32> to vector<128x128xi32>
    %21 = arith.cmpi ne, %19, %20 : vector<128x128xi32>
    %22 = vector.broadcast %16 : vector<1x128xi1> to vector<128x128xi1>
    %23 = arith.andi %21, %22 : vector<128x128xi1>
    %24 = vector.broadcast %0 : vector<128x1xi32> to vector<128x128xi32>
    %25 = vector.broadcast %1 : vector<1x128xi32> to vector<128x128xi32>
    %26 = arith.cmpi eq, %24, %25 : vector<128x128xi32>
    %27 = vector.broadcast %18 : vector<128x1xi1> to vector<128x128xi1>
    %28 = arith.andi %26, %27 : vector<128x128xi1>
    %29 = arith.andi %28, %23 : vector<128x128xi1>
    %cst_9 = arith.constant -1.000000e+30 : f32
    %30 = vector.broadcast %cst_9 : f32 to vector<128x128xf32>
    %31 = arith.select %23, %9, %30 : vector<128x128xi1>, vector<128x128xf32>
    %cst_10 = arith.constant dense<0xFF800000> : vector<128xf32>
    %32 = vector.multi_reduction <maximumf>, %31, %cst_10 [1] : vector<128x128xf32> to vector<128xf32>
    %33 = vector.shape_cast %32 : vector<128xf32> to vector<128x1xf32>
    %34 = vector.broadcast %33 : vector<128x1xf32> to vector<128x128xf32>
    %35 = arith.subf %31, %34 : vector<128x128xf32>
    %36 = math.exp %35 : vector<128x128xf32>
    %cst_11 = arith.constant dense<0.000000e+00> : vector<128xf32>
    %37 = vector.multi_reduction <add>, %36, %cst_11 [1] : vector<128x128xf32> to vector<128xf32>
    %38 = vector.shape_cast %37 : vector<128xf32> to vector<128x1xf32>
    %cst_12 = arith.constant 0.000000e+00 : f32
    %39 = vector.broadcast %cst_12 : f32 to vector<128x128xf32>
    %40 = arith.select %29, %35, %39 : vector<128x128xi1>, vector<128x128xf32>
    %cst_13 = arith.constant dense<0.000000e+00> : vector<128xf32>
    %41 = vector.multi_reduction <add>, %40, %cst_13 [1] : vector<128x128xf32> to vector<128xf32>
    %42 = vector.shape_cast %41 : vector<128xf32> to vector<128x1xf32>
    %43 = arith.extui %29 : vector<128x128xi1> to vector<128x128xi32>
    %44 = arith.sitofp %43 : vector<128x128xi32> to vector<128x128xf32>
    %cst_14 = arith.constant dense<0.000000e+00> : vector<128xf32>
    %45 = vector.multi_reduction <add>, %44, %cst_14 [1] : vector<128x128xf32> to vector<128xf32>
    %46 = vector.shape_cast %45 : vector<128xf32> to vector<128x1xf32>
    %cst_15 = arith.constant 0.000000e+00 : f32
    %47 = vector.broadcast %cst_15 : f32 to vector<128x1xf32>
    %48 = arith.cmpf ogt, %46, %47 : vector<128x1xf32>
    %cst_16 = arith.constant 1.000000e+00 : f32
    %49 = vector.broadcast %cst_16 : f32 to vector<128x1xf32>
    %50 = arith.maximumf %46, %49 : vector<128x1xf32>
    %51 = arith.divf %42, %50 : vector<128x1xf32>
    %52 = math.log %38 : vector<128x1xf32>
    %53 = arith.subf %51, %52 : vector<128x1xf32>
    %cst_17 = arith.constant -1.000000e+00 : f32
    %54 = vector.broadcast %cst_17 : f32 to vector<128x1xf32>
    %55 = arith.mulf %54, %53 : vector<128x1xf32>
    %56 = arith.andi %18, %48 : vector<128x1xi1>
    %57 = arith.extui %56 : vector<128x1xi1> to vector<128x1xi32>
    %58 = arith.sitofp %57 : vector<128x1xi32> to vector<128x1xf32>
    %59 = arith.mulf %55, %58 : vector<128x1xf32>
    %60 = vector.shape_cast %59 : vector<128x1xf32> to vector<1x128x1xf32>
    %cst_18 = arith.constant dense<0.000000e+00> : vector<1xf32>
    %61 = vector.multi_reduction <add>, %60, %cst_18 [1, 2] : vector<1x128x1xf32> to vector<1xf32>
    %62 = vector.shape_cast %61 : vector<1xf32> to vector<1x1x1xf32>
    %63 = vector.extract %62[0, 0, 0] : f32 from vector<1x1x1xf32>
    %64 = vector.shape_cast %58 : vector<128x1xf32> to vector<1x128x1xf32>
    %cst_19 = arith.constant dense<0.000000e+00> : vector<1xf32>
    %65 = vector.multi_reduction <add>, %64, %cst_19 [1, 2] : vector<1x128x1xf32> to vector<1xf32>
    %66 = vector.shape_cast %65 : vector<1xf32> to vector<1x1x1xf32>
    %67 = vector.extract %66[0, 0, 0] : f32 from vector<1x1x1xf32>
    %68 = vector.broadcast %63 : f32 to vector<8x128xf32>
    %c0_20 = arith.constant 0 : index
    %c0_21 = arith.constant 0 : index
    %69 = vector.load %arg4[%c0_20, %c0_21] : memref<8x128xf32, #tpu.memory_space<vmem>>, vector<8x128xf32>
    tpu.vector_store %arg4[%c0_20, %c0_21], %68 {strides = array<i32>} : memref<8x128xf32, #tpu.memory_space<vmem>>, vector<8x128xf32>,
    %70 = vector.broadcast %67 : f32 to vector<8x128xf32>
    %c0_22 = arith.constant 0 : index
    %c0_23 = arith.constant 0 : index
    %71 = vector.load %arg5[%c0_22, %c0_23] : memref<8x128xf32, #tpu.memory_space<vmem>>, vector<8x128xf32>
    tpu.vector_store %arg5[%c0_22, %c0_23], %70 {strides = array<i32>} : memref<8x128xf32, #tpu.memory_space<vmem>>, vector<8x128xf32>,
    return
  }
  func.func @transform_0(%arg0: i32) -> (i32, i32) {
    %c0_i32 = arith.constant 0 : i32
    %c0_i32_0 = arith.constant 0 : i32
    return %arg0, %c0_i32 : i32, i32
  }
  func.func @transform_1(%arg0: i32) -> (i32, i32) {
    %c0_i32 = arith.constant 0 : i32
    %c0_i32_0 = arith.constant 0 : i32
    %c0_i32_1 = arith.constant 0 : i32
    return %c0_i32, %c0_i32_0 : i32, i32
  }
  func.func @transform_2(%arg0: i32) -> (i32, i32) {
    %c0_i32 = arith.constant 0 : i32
    %c0_i32_0 = arith.constant 0 : i32
    %c0_i32_1 = arith.constant 0 : i32
    return %c0_i32, %c0_i32_0 : i32, i32
  }
  func.func @transform_3(%arg0: i32) -> (i32, i32) {
    %c0_i32 = arith.constant 0 : i32
    %c0_i32_0 = arith.constant 0 : i32
    return %arg0, %c0_i32 : i32, i32
  }
  func.func @transform_4(%arg0: i32) -> (i32, i32) {
    %c0_i32 = arith.constant 0 : i32
    %c0_i32_0 = arith.constant 0 : i32
    return %arg0, %c0_i32 : i32, i32
  }
}

</mosaic_0001>

<bundles_post_ra>
// kernel: tpu_custom_call.1
= control target key start
LH: loop header
LB: loop body
LE: loop exit
PB: predicated region body
PF: predicated region fallthrough
CT: control target
= control target key end

     0   :  { %10 = vsyncpa [#allocation3], 0  ;;  %v2585_v5 = vmov 0   ;;  %s2568_s0 = inlined_call_operand.vmem [shape: s32[128,1], index: 0, kind: input, shape index: {}]   ;;  %s2569_s1 = inlined_call_operand.vmem [shape: s32[1,128], index: 1, kind: input, shape index: {}]   ;;  %s2570_s2 = inlined_call_operand.vmem [shape: f32[128,128], index: 2, kind: input, shape index: {}]   ;;  %s2571_s3 = inlined_call_operand.hbm [shape: f32[8,128], index: 3, kind: output, shape index: {0}]   ;;  %s2572_s4 = inlined_call_operand.hbm [shape: f32[8,128], index: 4, kind: output, shape index: {1}]  }
   0x1   :  { %v69_v0 = vld [vmem:[%s2570_s2] sm:$0xff]  ;;  %v1403_v1 = vld [vmem:[%s2570_s2 + $0x8] sm:$0xff]  ;;  %v1408_v2 = vld [vmem:[%s2570_s2 + $0x10] sm:$0xff]  ;;  %1223 = vset.pattern.permute.xlu0 %v2585_v5  ;;  %1222 = vset.pattern.permute.xlu1 %v2585_v5 }
   0x2   :  { %v1166_v3 = vpack.c.bf16 %v1403_v1, %v69_v0  ;;  %v1414_v4 = vld [vmem:[%s2570_s2 + $0x18] sm:$0xff]  ;;  %v77_v7 = vld [vmem:[%s2570_s2 + $0x40] sm:$0xff]  ;;  %v53_v8 = vmul.f32 14.285714, %v69_v0  ;;  %v1426_v10 = vld [vmem:[%s2568_s0 + $0x8] sm:$0xff] }
   0x3   :  { %v1170_v6 = vpack.c.bf16 %v1414_v4, %v1408_v2  ;;  %v61_v9 = vmul.f32 14.285714, %v77_v7  ;;  %2669 = vst [vmem:[#allocation8_spill] sm:$0xff] %v1426_v10  ;;  %v1431_v11 = vld [vmem:[%s2570_s2 + $0x20] sm:$0xff]  ;;  %v1436_v12 = vld [vmem:[%s2570_s2 + $0x28] sm:$0xff]  ;;  %325 = vperm.xlu0 %1223, %v1426_v10   ;;  %v1444_v14 = vld [vmem:[%s2568_s0 + $0x10] sm:$0xff] }
   0x4   :  { %1167 = vmatprep.subr.bf16.mxu0 %v1166_v3  ;;  %1198 = vmatprep.subr.bf16.mxu1 %v1166_v3  ;;  %v1174_v13 = vpack.c.bf16 %v1436_v12, %v1431_v11  ;;  %2670 = vst [vmem:[#allocation9_spill] sm:$0xff] %v1444_v14  ;;  %v1449_v15 = vld [vmem:[%s2568_s0] sm:$0xff]  ;;  %vm2591_vm0 = vcmp.ge.s32.totalorder %v1444_v14, 0  ;;  %vm2592_vm2 = vcmp.ge.s32.totalorder %v1426_v10, 0  ;;  %v1465_v18 = vld [vmem:[%s2570_s2 + $0x30] sm:$0xff]  ;;  %v1470_v19 = vld [vmem:[%s2570_s2 + $0x38] sm:$0xff] }
   0x5   :  { %1169 = vmatpush3.bf16.xpose.msra.mxu0 %v1166_v3  ;;  %1206 = vmatpush3.bf16.xpose.msra.mxu1 %v1166_v3  ;;  %2671 = vst [vmem:[#allocation10_spill] sm:$0xff] %v1449_v15  ;;  %vm2598_vm1 = vcmp.ge.s32.totalorder %v1449_v15, 0  ;;  %v391_v17 = vsel %vm2591_vm0, 1, %v2585_v5  ;;  %v390_v20 = vsel %vm2592_vm2, 1, %v2585_v5  ;;  %v1478_v21 = vld [vmem:[%s2568_s0 + $0x20] sm:$0xff]  ;;  %v1178_v22 = vpack.c.bf16 %v1470_v19, %v1465_v18 }
   0x6   :  { %1171 = vmatprep.subr.bf16.mxu0 %v1170_v6  ;;  %1199 = vmatprep.subr.bf16.mxu1 %v1170_v6  ;;  %v389_v16 = vsel %vm2598_vm1, 1, %v2585_v5  ;;  %2672 = vst [vmem:[#allocation11_spill] sm:$0xff] %v1478_v21  ;;  %vm2583_vm3 = vcmp.ge.s32.totalorder %v1478_v21, 0 }
   0x7   :  { %1142 = vmatprep.mubr.f32.mxu0 %v53_v8  ;;  %1154 = vmatprep.mubr.f32.mxu1 %v61_v9 }
   0x8   :  { %322 = vperm.xlu1 %1222, %v1449_v15   ;;  %328 = vperm.xlu0 %1223, %v1444_v14  }
   0xc   :  { %406 = vperm.xlu1 %1222, %v389_v16   ;;  %412 = vperm.xlu0 %1223, %v391_v17  }
   0xd   :  { %1173 = vmatpush3.bf16.xpose.msra.mxu0 %v1170_v6  ;;  %1207 = vmatpush3.bf16.xpose.msra.mxu1 %v1170_v6 }
   0xe   :  { %1175 = vmatprep.subr.bf16.mxu0 %v1174_v13  ;;  %1200 = vmatprep.subr.bf16.mxu1 %v1174_v13 }
   0xf   :  { %11 = vsyncpa [#allocation5], 0  ;;  %v1487_v23 = vld [vmem:[%s2568_s0 + $0x18] sm:$0xff]  ;;  %v393_v24 = vsel %vm2583_vm3, 1, %v2585_v5  ;;  %v1496_v25 = vld [vmem:[%s2570_s2 + $0x48] sm:$0xff]  ;;  %v2711_v15 = vmov 0 }
  0x10   :  { %409 = vperm.xlu1 %1222, %v390_v20   ;;  %334 = vperm.xlu0 %1223, %v1478_v21   ;;  %2673 = vst [vmem:[#allocation12_spill] sm:$0xff] %v1487_v23  ;;  %vm2584_vm4 = vcmp.ge.s32.totalorder %v1487_v23, 0  ;;  %v1505_v27 = vld [vmem:[%s2568_s0 + $0x30] sm:$0xff]  ;;  %v1182_v28 = vpack.c.bf16 %v1496_v25, %v77_v7  ;;  %v1513_v29 = vld [vmem:[%s2568_s0 + $0x28] sm:$0xff]  ;;  %v1527_v32 = vld [vmem:[%s2570_s2 + $0x58] sm:$0xff]  ;;  %s1371_s28 = smov [#allocation4]  }
  0x11   :  { %v392_v26 = vsel %vm2584_vm4, 1, %v2585_v5  ;;  %2674 = vst [vmem:[#allocation13_spill] sm:$0xff] %v1505_v27  ;;  %vm2581_vm5 = vcmp.ge.s32.totalorder %v1505_v27, 0  ;;  %2675 = vst [vmem:[#allocation14_spill] sm:$0xff] %v1513_v29  ;;  %vm2582_vm6 = vcmp.ge.s32.totalorder %v1513_v29, 0  ;;  %v1522_v31 = vld [vmem:[%s2570_s2 + $0x50] sm:$0xff] }
  0x12   :  { %v395_v30 = vsel %vm2581_vm5, 1, %v2585_v5  ;;  %v394_v33 = vsel %vm2582_vm6, 1, %v2585_v5  ;;  %v1536_v34 = vld [vmem:[%s2568_s0 + $0x40] sm:$0xff]  ;;  %v1186_v35 = vpack.c.bf16 %v1527_v32, %v1522_v31  ;;  %v1545_v36 = vld [vmem:[%s2568_s0 + $0x38] sm:$0xff]  ;;  %v82_v39 = vld [vmem:[%s2570_s2 + $0x68] sm:$0xff]  ;;  %s1034_s29 = sshll.u32 %s1371_s28, 4  ;;  %s2537_s29 = int_to_ptr.vmem [resolvable:$true] %s1034_s29 }
  0x13   :  { %2676 = vst [vmem:[#allocation15_spill] sm:$0xff] %v1536_v34  ;;  %vm2578_vm7 = vcmp.ge.s32.totalorder %v1536_v34, 0  ;;  %2677 = vst [vmem:[#allocation16_spill] sm:$0xff] %v1545_v36  ;;  %vm2580_vm8 = vcmp.ge.s32.totalorder %v1545_v36, 0  ;;  %v81_v38 = vld [vmem:[%s2570_s2 + $0x60] sm:$0xff]  ;;  %v1564_v41 = vld [vmem:[%s2568_s0 + $0x48] sm:$0xff] }
  0x14   :  { %331 = vperm.xlu1 %1222, %v1487_v23   ;;  %418 = vperm.xlu0 %1223, %v393_v24   ;;  %v397_v37 = vsel %vm2578_vm7, 1, %v2585_v5  ;;  %v396_v40 = vsel %vm2580_vm8, 1, %v2585_v5  ;;  %2678 = vst [vmem:[#allocation17_spill] sm:$0xff] %v1564_v41  ;;  %v1190_v42 = vpack.c.bf16 %v82_v39, %v81_v38  ;;  %vm2579_vm9 = vcmp.ge.s32.totalorder %v1564_v41, 0  ;;  %v1570_v43 = vld [vmem:[%s2568_s0 + $0x60] sm:$0xff]  ;;  %v1575_v44 = vld [vmem:[%s2568_s0 + $0x50] sm:$0xff] }
  0x15   :  { %1177 = vmatpush3.bf16.xpose.msra.mxu0 %v1174_v13  ;;  %1208 = vmatpush3.bf16.xpose.msra.mxu1 %v1174_v13  ;;  %2679 = vst [vmem:[#allocation18_spill] sm:$0xff] %v1570_v43  ;;  %2680 = vst [vmem:[#allocation19_spill] sm:$0xff] %v1575_v44  ;;  %v398_v45 = vsel %vm2579_vm9, 1, %v2585_v5  ;;  %vm2575_vm10 = vcmp.ge.s32.totalorder %v1570_v43, 0  ;;  %vm2576_vm11 = vcmp.ge.s32.totalorder %v1575_v44, 0  ;;  %v1586_v46 = vld [vmem:[%s2568_s0 + $0x68] sm:$0xff] }
  0x16   :  { %1179 = vmatprep.subr.bf16.mxu0 %v1178_v22  ;;  %1201 = vmatprep.subr.bf16.mxu1 %v1178_v22  ;;  %2681 = vst [vmem:[#allocation20_spill] sm:$0xff] %v1586_v46  ;;  %v83_v47 = vld [vmem:[%s2570_s2 + $0x70] sm:$0xff]  ;;  %v84_v48 = vld [vmem:[%s2570_s2 + $0x78] sm:$0xff]  ;;  %v401_v49 = vsel %vm2575_vm10, 1, %v2585_v5  ;;  %v399_v50 = vsel %vm2576_vm11, 1, %v2585_v5  ;;  %vm2574_vm12 = vcmp.ge.s32.totalorder %v1586_v46, 0 }
  0x17   :  { %v1194_v51 = vpack.c.bf16 %v84_v48, %v83_v47  ;;  %v1605_v52 = vld [vmem:[%s2568_s0 + $0x70] sm:$0xff]  ;;  %v402_v53 = vsel %vm2574_vm12, 1, %v2585_v5  ;;  %v1613_v54 = vld [vmem:[%s2568_s0 + $0x58] sm:$0xff]  ;;  %v54_v57 = vmul.f32 14.285714, %v1403_v1 }
  0x18   :  { %415 = vperm.xlu1 %1222, %v392_v26   ;;  %340 = vperm.xlu0 %1223, %v1505_v27   ;;  %2682 = vst [vmem:[#allocation21_spill] sm:$0xff] %v1605_v52  ;;  %2683 = vst [vmem:[#allocation22_spill] sm:$0xff] %v1613_v54  ;;  %vm2573_vm13 = vcmp.ge.s32.totalorder %v1605_v52, 0  ;;  %vm2577_vm14 = vcmp.ge.s32.totalorder %v1613_v54, 0  ;;  %v62_v58 = vmul.f32 14.285714, %v1496_v25 }
  0x19   :  { %v403_v55 = vsel %vm2573_vm13, 1, %v2585_v5  ;;  %v400_v56 = vsel %vm2577_vm14, 1, %v2585_v5  ;;  %v55_v59 = vmul.f32 14.285714, %v1408_v2  ;;  %v63_v60 = vmul.f32 14.285714, %v1522_v31 }
  0x1a   :  { %v56_v61 = vmul.f32 14.285714, %v1414_v4  ;;  %v64_v62 = vmul.f32 14.285714, %v1527_v32  ;;  %v57_v63 = vmul.f32 14.285714, %v1431_v11  ;;  %v230_v31 = vlaneseq }
  0x1b   :  { %v65_v0 = vmul.f32 14.285714, %v81_v38  ;;  %v58_v1 = vmul.f32 14.285714, %v1436_v12  ;;  %v66_v2 = vmul.f32 14.285714, %v82_v39 }
  0x1c   :  { %337 = vperm.xlu1 %1222, %v1513_v29   ;;  %424 = vperm.xlu0 %1223, %v395_v30   ;;  %v59_v3 = vmul.f32 14.285714, %v1465_v18  ;;  %v67_v6 = vmul.f32 14.285714, %v83_v47  ;;  %v60_v4 = vmul.f32 14.285714, %v1470_v19 }
  0x1d   :  { %1181 = vmatpush3.bf16.xpose.msra.mxu0 %v1178_v22  ;;  %1209 = vmatpush3.bf16.xpose.msra.mxu1 %v1178_v22  ;;  %v68_v7 = vmul.f32 14.285714, %v84_v48 }
  0x1e   :  { %1183 = vmatprep.subr.bf16.mxu0 %v1182_v28  ;;  %1202 = vmatprep.subr.bf16.mxu1 %v1182_v28 }
  0x20   :  { %421 = vperm.xlu1 %1222, %v394_v33   ;;  %346 = vperm.xlu0 %1223, %v1536_v34  }
  0x24   :  { %343 = vperm.xlu1 %1222, %v1545_v36   ;;  %430 = vperm.xlu0 %1223, %v397_v37   ;;  %v1676_v37 = vshrl.u32 %v230_v31, 7 }
  0x25   :  { %1185 = vmatpush3.bf16.xpose.msra.mxu0 %v1182_v28  ;;  %1210 = vmatpush3.bf16.xpose.msra.mxu1 %v1182_v28 }
  0x26   :  { %1187 = vmatprep.subr.bf16.mxu0 %v1186_v35  ;;  %1203 = vmatprep.subr.bf16.mxu1 %v1186_v35  ;;  %v238_v23 = vadd.s32 56, %v1676_v37 }
  0x28   :  { %427 = vperm.xlu1 %1222, %v396_v40   ;;  %349 = vperm.xlu0 %1223, %v1564_v41   ;;  %v302_v40 = vsub.s32 0, %v1676_v37  ;;  %v244_v41 = vadd.s32 104, %v1676_v37 }
  0x2c   :  { %352 = vperm.xlu1 %1222, %v1575_v44   ;;  %433 = vperm.xlu0 %1223, %v398_v45  }
  0x2d   :  { %1189 = vmatpush3.bf16.xpose.msra.mxu0 %v1186_v35  ;;  %1211 = vmatpush3.bf16.xpose.msra.mxu1 %v1186_v35  ;;  %v34_v35 = vld [vmem:[%s2569_s1] sm:$0x1] }
  0x2e   :  { %1191 = vmatprep.subr.bf16.mxu0 %v1190_v42  ;;  %1204 = vmatprep.subr.bf16.mxu1 %v1190_v42  ;;  %vm266_vm15 = vcmp.ge.s32.totalorder %v34_v35, 0 }
  0x30   :  { %442 = vperm.xlu1 %1222, %v401_v49   ;;  %436 = vperm.xlu0 %1223, %v399_v50   ;;  %v1692_v50 = vand.u32 127, %v230_v31  ;;  %v241_v31 = vadd.s32 80, %v1676_v37 }
  0x32   :  { %vm293_vm4 = vcmp.ne.s32.totalorder %v241_v31, %v1692_v50 }
  0x34   :  { %445 = vperm.xlu1 %1222, %v402_v53   ;;  %355 = vperm.xlu0 %1223, %v1613_v54  }
  0x35   :  { %1193 = vmatpush3.bf16.xpose.msra.mxu0 %v1190_v42  ;;  %1212 = vmatpush3.bf16.xpose.msra.mxu1 %v1190_v42  ;;  %v299_v42 = vsel %vm266_vm15, 1, %v2585_v5 }
  0x36   :  { %1195 = vmatprep.subr.bf16.mxu0 %v1194_v51  ;;  %1205 = vmatprep.subr.bf16.mxu1 %v1194_v51  ;;  %v1686_v47 = vrot.slane %v299_v42, %v302_v40 }
  0x38   :  { %448 = vperm.xlu1 %1222, %v403_v55   ;;  %439 = vperm.xlu0 %1223, %v400_v56   ;;  %vm304_vm13 = vcmp.eq.s32.totalorder %v1686_v47, 1  ;;  %v2684_v55 = vmov 0  ;;  %v2719_v47 = vmov 0  }
  0x3c   :  { %358 = vperm.xlu0 %1223, %v1570_v43  }
  0x3d   :  { %1197 = vmatpush3.bf16.xpose.msra.mxu0 %v1194_v51  ;;  %1213 = vmatpush3.bf16.xpose.msra.mxu1 %v1194_v51  ;;  %v245_v51 = vadd.s32 112, %v1676_v37 }
  0x3f   :  { %vm297_vm12 = vcmp.ne.s32.totalorder %v245_v51, %v1692_v50 }
  0x40   :  { %361 = vperm.xlu0 %1223, %v1586_v46   ;;  %vm1701_vm15 = vmand %vm297_vm12, %vm304_vm13 }
  0x41   :  { %v2685_v55 = vsel %vm1701_vm15, 4294967295, %v2684_v55 }
  0x44   :  { %1143 = vmatmul.mubr.f32.vlgmr.msra.gmra.mrb[0].mxu0 %v54_v57  ;;  %1155 = vmatmul.mubr.f32.vlgmr.msra.gmra.mrb[0].mxu1 %v62_v58  ;;  %v1709_v58 = vrot.slane %v34_v35, %v302_v40  ;;  %v233_v35 = vadd.s32 16, %v1676_v37 }
  0x45   :  { %1145 = vmatprep.mubr.f32.mxu0 %v55_v59  ;;  %1157 = vmatprep.mubr.f32.mxu1 %v63_v60 }
  0x46   :  { %364 = vperm.xlu0 %1223, %v1605_v52  }
  0x48   :  { %1146 = vmatmul.mubr.f32.gmra.mrb[2].mxu0 %v56_v61  ;;  %1158 = vmatmul.mubr.f32.gmra.mrb[2].mxu1 %v64_v62  ;;  %v2686_v61 = vmov 0  ;;  %v232_v62 = vadd.s32 8, %v1676_v37 }
  0x49   :  { %1148 = vmatprep.mubr.f32.mxu0 %v57_v63  ;;  %1160 = vmatprep.mubr.f32.mxu1 %v65_v0  ;;  %v240_v63 = vadd.s32 72, %v1676_v37  ;;  %v234_v0 = vadd.s32 24, %v1676_v37 }
  0x4a   :  { %vm284_vm12 = vcmp.ne.s32.totalorder %v232_v62, %v1692_v50  ;;  %v2695_v62 = vmov 0 }
  0x4b   :  { %vm292_vm7 = vcmp.ne.s32.totalorder %v240_v63, %v1692_v50  ;;  %vm1724_vm9 = vmand %vm284_vm12, %vm304_vm13  ;;  %vm286_vm8 = vcmp.ne.s32.totalorder %v234_v0, %v1692_v50  ;;  %v2697_v63 = vmov 0 }
  0x4c   :  { %1149 = vmatmul.mubr.f32.gmra.mrb[4].mxu0 %v58_v1  ;;  %1161 = vmatmul.mubr.f32.gmra.mrb[4].mxu1 %v66_v2  ;;  %v239_v1 = vadd.s32 64, %v1676_v37  ;;  %vm1760_vm6 = vmand %vm286_vm8, %vm304_vm13 }
  0x4d   :  { %1151 = vmatprep.mubr.f32.mxu0 %v59_v3  ;;  %1163 = vmatprep.mubr.f32.mxu1 %v67_v6  ;;  %v242_v3 = vadd.s32 88, %v1676_v37  ;;  %v2691_v6 = vmov 0  ;;  %v2696_v62 = vsel %vm1760_vm6, 4294967295, %v2695_v62  ;;  %vm1800_vm8 = vmand %vm293_vm4, %vm304_vm13 }
  0x4e   :  { %vm291_vm12 = vcmp.ne.s32.totalorder %v239_v1, %v1692_v50 }
  0x4f   :  { %vm294_vm5 = vcmp.ne.s32.totalorder %v242_v3, %v1692_v50  ;;  %vm1766_vm3 = vmand %vm291_vm12, %vm304_vm13  ;;  %v2699_v3 = vmov 0 }
  0x50   :  { %1152 = vmatmul.mubr.f32.gmra.mrb[6].mxu0 %v60_v4  ;;  %1164 = vmatmul.mubr.f32.gmra.mrb[6].mxu1 %v68_v7  ;;  %v2698_v63 = vsel %vm1766_vm3, 4294967295, %v2697_v63 }
  0x82   :  { %v1637_v8 = vpop.permute.xlu0 %325 }
  0x87   :  { %v1639_v9 = vpop.permute.xlu1 %322  ;;  %v1641_v11 = vpop.permute.xlu0 %328 }
  0x8b   :  { %v1643_v12 = vpop.permute.xlu1 %406  ;;  %v1645_v13 = vpop.permute.xlu0 %412 }
  0x8f   :  { %v1647_v16 = vpop.permute.xlu1 %409  ;;  %v1649_v17 = vpop.permute.xlu0 %334 }
  0x93   :  { %v1651_v18 = vpop.permute.xlu1 %331  ;;  %v1653_v19 = vpop.permute.xlu0 %418 }
  0x97   :  { %v1655_v20 = vpop.permute.xlu1 %415  ;;  %v1657_v22 = vpop.permute.xlu0 %340 }
  0x9b   :  { %v1659_v24 = vpop.permute.xlu0 %424  ;;  %v1661_v25 = vpop.permute.xlu1 %337 }
  0x9f   :  { %v1663_v26 = vpop.permute.xlu0 %346  ;;  %v1665_v28 = vpop.permute.xlu1 %421 }
  0xa3   :  { %v1667_v30 = vpop.permute.xlu0 %430  ;;  %v1671_v33 = vpop.permute.xlu1 %343 }
  0xa7   :  { %v1669_v32 = vpop.permute.xlu0 %349  ;;  %v1680_v39 = vpop.permute.xlu1 %427 }
  0xab   :  { %v1678_v38 = vpop.permute.xlu0 %433  ;;  %v1690_v49 = vpop.permute.xlu1 %352 }
  0xaf   :  { %v1684_v45 = vpop.permute.xlu0 %436  ;;  %v1705_v56 = vpop.permute.xlu1 %442 }
  0xb3   :  { %v1688_v48 = vpop.permute.xlu0 %355  ;;  %v446_v59 = vpop.permute.xlu1 %445 }
  0xb4   :  { %vm466_vm10 = vcmp.eq.s32.totalorder %v446_v59, 1  ;;  %v2693_v59 = vmov 0 }
  0xb7   :  { %v1697_v53 = vpop.permute.xlu0 %439 }
  0xbb   :  { %v1707_v57 = vpop.permute.xlu0 %358 }
  0xbf   :  { %v362_v60 = vpop.permute.xlu0 %361 }
  0xc0   :  { %vm386_vm11 = vcmp.eq.s32.totalorder %v362_v60, %v1709_v58 }
  0xc1   :  { %vm1712_vm14 = vmand %vm386_vm11, %vm466_vm10  ;;  %vm283_vm11 = vcmp.ne.s32.totalorder %v1676_v37, %v1692_v50 }
  0xc2   :  { %v2687_v61 = vsel %vm1712_vm14, 4294967295, %v2686_v61  ;;  %vm1731_vm10 = vmand %vm292_vm7, %vm304_vm13  ;;  %vm296_vm14 = vcmp.ne.s32.totalorder %v244_v41, %v1692_v50  ;;  %v2709_v41 = vmov 0 }
  0xc3   :  { %2688 = vst [vmem:[#allocation23_spill] sm:$0xff] %v2687_v61  ;;  %v2692_v6 = vsel %vm1731_vm10, 4294967295, %v2691_v6  ;;  %vm1751_vm7 = vmand %vm283_vm11, %vm304_vm13 }
  0xc4   :  { %v2694_v59 = vsel %vm1751_vm7, 4294967295, %v2693_v59  ;;  %vm1772_vm11 = vmand %vm294_vm5, %vm304_vm13  ;;  %vm285_vm5 = vcmp.ne.s32.totalorder %v233_v35, %v1692_v50  ;;  %v2703_v35 = vmov 0 }
  0xc5   :  { %v2700_v3 = vsel %vm1772_vm11, 4294967295, %v2699_v3  ;;  %vm1806_vm12 = vmand %vm285_vm5, %vm304_vm13 }
  0xc6   :  { %v2704_v35 = vsel %vm1806_vm12, 4294967295, %v2703_v35 }
 0x117   :  { %v1144_v4 = vpop.f32.mrb[0].mxu0  ;;  %v1156_v7 = vpop.f32.mrb[0].mxu1 }
 0x118   :  { %v151_v40 = vpop.f32.mrb[1].mxu0  ;;  %v1743_v42 = vsel %vm1724_vm9, %v1144_v4, -1e+30  ;;  %v1747_v51 = vsel %vm1731_vm10, %v1156_v7, -1e+30  ;;  %v191_v60 = vpop.f32.mrb[1].mxu1 }
 0x119   :  { %519 = vmax.xlane.f32.xlu0 %v1743_v42  ;;  %535 = vmax.xlane.f32.xlu1 %v1747_v51  ;;  %v235_v4 = vadd.s32 32, %v1676_v37  ;;  %v236_v7 = vadd.s32 40, %v1676_v37  ;;  %v1781_v5 = vsel %vm1751_vm7, %v151_v40, -1e+30  ;;  %v1792_v31 = vsel %vm1766_vm3, %v191_v60, -1e+30 }
 0x11a   :  { %v243_v60 = vadd.s32 96, %v1676_v37  ;;  %vm290_vm3 = vcmp.ne.s32.totalorder %v238_v23, %v1692_v50  ;;  %v2715_v23 = vmov 0 }
 0x11b   :  { %v1147_v0 = vpop.f32.mrb[2].mxu0  ;;  %v1159_v1 = vpop.f32.mrb[2].mxu1  ;;  %vm287_vm0 = vcmp.ne.s32.totalorder %v235_v4, %v1692_v50  ;;  %vm288_vm2 = vcmp.ne.s32.totalorder %v236_v7, %v1692_v50  ;;  %v2705_v4 = vmov 0  ;;  %v2707_v7 = vmov 0 }
 0x11c   :  { %v1785_v52 = vsel %vm1760_vm6, %v1147_v0, -1e+30  ;;  %v161_v46 = vpop.f32.mrb[3].mxu0  ;;  %v201_v43 = vpop.f32.mrb[3].mxu1  ;;  %v1796_v40 = vsel %vm1772_vm11, %v1159_v1, -1e+30  ;;  %vm1826_vm4 = vmand %vm287_vm0, %vm304_vm13  ;;  %vm295_vm1 = vcmp.ne.s32.totalorder %v243_v60, %v1692_v50 }
 0x11d   :  { %517 = vmax.xlane.f32.xlu0 %v1781_v5  ;;  %523 = vmax.xlane.f32.xlu1 %v1785_v52  ;;  %v2701_v0 = vmov 0  ;;  %v1818_v36 = vsel %vm1800_vm8, %v201_v43, -1e+30  ;;  %v1822_v27 = vsel %vm1806_vm12, %v161_v46, -1e+30  ;;  %v2706_v4 = vsel %vm1826_vm4, 4294967295, %v2705_v4  ;;  %vm1832_vm5 = vmand %vm288_vm2, %vm304_vm13 }
 0x11e   :  { %v2702_v0 = vsel %vm1800_vm8, 4294967295, %v2701_v0  ;;  %v2708_v7 = vsel %vm1832_vm5, 4294967295, %v2707_v7  ;;  %v237_v43 = vadd.s32 48, %v1676_v37  ;;  %vm1852_vm0 = vmand %vm295_vm1, %vm304_vm13  ;;  %vm455_vm6 = vcmp.eq.s32.totalorder %v1645_v13, 1 }
 0x11f   :  { %v1150_v44 = vpop.f32.mrb[4].mxu0  ;;  %v1162_v54 = vpop.f32.mrb[4].mxu1  ;;  %v2710_v41 = vsel %vm1852_vm0, 4294967295, %v2709_v41  ;;  %vm1858_vm2 = vmand %vm296_vm14, %vm304_vm13 }
 0x120   :  { %v171_v1 = vpop.f32.mrb[5].mxu0  ;;  %v211_v34 = vpop.f32.mrb[5].mxu1  ;;  %v1848_v60 = vsel %vm1832_vm5, %v1150_v44, -1e+30  ;;  %v2712_v15 = vsel %vm1858_vm2, 4294967295, %v2711_v15  ;;  %vm289_vm8 = vcmp.ne.s32.totalorder %v237_v43, %v1692_v50  ;;  %v2713_v43 = vmov 0  ;;  %vm1883_vm14 = vmand %vm290_vm3, %vm304_vm13 }
 0x121   :  { %533 = vmax.xlane.f32.xlu0 %v1792_v31  ;;  %539 = vmax.xlane.f32.xlu1 %v1796_v40  ;;  %v1844_v10 = vsel %vm1826_vm4, %v171_v1, -1e+30  ;;  %v246_v1 = vadd.s32 120, %v1676_v37  ;;  %v1869_v44 = vsel %vm1852_vm0, %v211_v34, -1e+30  ;;  %vm1877_vm1 = vmand %vm289_vm8, %vm304_vm13  ;;  %v2716_v23 = vsel %vm1883_vm14, 4294967295, %v2715_v23 }
 0x122   :  { %v1873_v61 = vsel %vm1858_vm2, %v1162_v54, -1e+30  ;;  %v2714_v43 = vsel %vm1877_vm1, 4294967295, %v2713_v43  ;;  %v2717_v37 = vmov 0  ;;  %vm374_vm8 = vcmp.eq.s32.totalorder %v1637_v8, %v1709_v58 }
 0x123   :  { %v1153_v29 = vpop.f32.mrb[6].mxu0  ;;  %v1165_v21 = vpop.f32.mrb[6].mxu1  ;;  %vm298_vm5 = vcmp.ne.s32.totalorder %v246_v1, %v1692_v50  ;;  %vm453_vm2 = vcmp.eq.s32.totalorder %v1643_v12, 1  ;;  %vm382_vm0 = vcmp.eq.s32.totalorder %v1669_v32, %v1709_v58  ;;  %vm375_vm4 = vcmp.eq.s32.totalorder %v1641_v11, %v1709_v58 }
 0x124   :  { %v181_v46 = vpop.f32.mrb[7].mxu0  ;;  %v221_v14 = vpop.f32.mrb[7].mxu1  ;;  %v1896_v54 = vsel %vm1883_vm14, %v1153_v29, -1e+30  ;;  %vm1900_vm3 = vmand %vm298_vm5, %vm304_vm13  ;;  %v1914_v29 = vld [vmem:[%s2568_s0 + $0x78] sm:$0xff]  ;;  %vm454_vm5 = vcmp.eq.s32.totalorder %v1647_v16, 1 }
 0x125   :  { %537 = vmax.xlane.f32.xlu0 %v1818_v36  ;;  %521 = vmax.xlane.f32.xlu1 %v1822_v27  ;;  %v1892_v34 = vsel %vm1877_vm1, %v181_v46, -1e+30  ;;  %v2718_v37 = vsel %vm1900_vm3, 4294967295, %v2717_v37  ;;  %v1908_v50 = vsel %vm1900_vm3, %v1165_v21, -1e+30  ;;  %vm2623_vm13 = vcmp.ge.s32.totalorder %v1914_v29, 0  ;;  %vm1930_vm1 = vmand %vm374_vm8, %vm454_vm5 }
 0x126   :  { %v404_v46 = vsel %vm2623_vm13, 1, %v2719_v47  ;;  %vm373_vm3 = vcmp.eq.s32.totalorder %v1639_v9, %v1709_v58  ;;  %vm462_vm14 = vcmp.eq.s32.totalorder %v1678_v38, 1  ;;  %v1940_v8 = vsel %vm1701_vm15, %v221_v14, -1e+30  ;;  %v2149_v47 = vpop.permute.xlu1 %448  ;;  %s1370_s0 = smov [#allocation2]  }
 0x127   :  { %vm1934_vm13 = vmand %vm373_vm3, %vm453_vm2  ;;  %v2724_v9 = vmov 0  ;;  %vm384_vm8 = vcmp.eq.s32.totalorder %v1688_v48, %v1709_v58  ;;  %vm464_vm2 = vcmp.eq.s32.totalorder %v1697_v53, 1  ;;  %v2726_v14 = vmov 0  ;;  %s1024_s27 = sshll.u32 %s1370_s0, 4  ;;  %s1025_s27 = int_to_ptr.vmem [resolvable:$true] %s1024_s27 }
 0x128   :  { %vm1945_vm11 = vmand %vm382_vm0, %vm462_vm14  ;;  %vm376_vm5 = vcmp.eq.s32.totalorder %v1651_v18, %v1709_v58  ;;  %vm456_vm15 = vcmp.eq.s32.totalorder %v1655_v20, 1  ;;  %v2728_v11 = vmov 0  ;;  %v1369_v12 = vmov 0.0   ;;  %s1320_s6 = scalar_lea.vmem %s1025_s27, 128  ;;  %p1325_p1 = scmp.lt.s32.totalorder %s1025_s27, %s1025_s27 }
 0x129   :  { %525 = vmax.xlane.f32.xlu0 %v1844_v10  ;;  %527 = vmax.xlane.f32.xlu1 %v1848_v60  ;;  %v2725_v9 = vsel %vm1945_vm11, 4294967295, %v2724_v9  ;;  %vm2635_vm3 = vmand %vm1930_vm1, %vm1724_vm9  ;;  %v2741_v48 = vmov 0  ;;  %p1321_p0 = scmp.ne.s32.totalorder %s1025_s27, %s1320_s6  ;;  %p1326_p2 = scmp.lt.s32.totalorder %s1320_s6, %s1320_s6 }
 0x12a   :  { %vm2634_vm0 = vmand %vm1934_vm13, %vm1751_vm7  ;;  %v1047_v16 = vsel %vm2635_vm3, 1.0, %v1369_v12  ;;  %vm457_vm3 = vcmp.eq.s32.totalorder %v1653_v19, 1  ;;  %vm2734_vm7 = vnez %v2696_v62 }
 0x12b   :  { %vm1961_vm14 = vmand %vm375_vm4, %vm455_vm6  ;;  %v1046_v13 = vsel %vm2634_vm0, 1.0, %v1369_v12  ;;  %vm2730_vm4 = vnez %v2704_v35  ;;  %vm377_vm0 = vcmp.eq.s32.totalorder %v1649_v17, %v1709_v58  ;;  %v2735_v17 = vmov 0  ;;  %p1327_p3 = por %p1326_p2, %p1325_p1 }
 0x12c   :  { %v2727_v14 = vsel %vm1961_vm14, 4294967295, %v2726_v14  ;;  %vm1968_vm12 = vmand %vm384_vm8, %vm464_vm2 }
 0x12d   :  { %541 = vmax.xlane.f32.xlu0 %v1869_v44  ;;  %543 = vmax.xlane.f32.xlu1 %v1873_v61  ;;  %v2729_v11 = vsel %vm1968_vm12, 4294967295, %v2728_v11  ;;  %vm2638_vm6 = vmand %vm1945_vm11, %vm1731_vm10  ;;  %vm378_vm11 = vcmp.eq.s32.totalorder %v1661_v25, %v1709_v58  ;;  %v2738_v25 = vmov 0  ;;  %p1328_p4 = pnand %p1327_p3, %p1321_p0 }
 0x12e   :  { %vm2640_vm8 = vmand %vm1961_vm14, %vm2730_vm4  ;;  %v1055_v20 = vsel %vm2638_vm6, 1.0, %v1369_v12  ;;  %vm460_vm14 = vcmp.eq.s32.totalorder %v1680_v39, 1 }
 0x12f   :  { %vm1992_vm2 = vmand %vm376_vm5, %vm456_vm15  ;;  %v1048_v32 = vsel %vm2640_vm8, 1.0, %v1369_v12  ;;  %vm2733_vm15 = vnez %v2700_v3  ;;  %vm458_vm8 = vcmp.eq.s32.totalorder %v1665_v28, 1 }
 0x130   :  { %vm2642_vm5 = vmand %vm1968_vm12, %vm2733_vm15  ;;  %vm459_vm15 = vcmp.eq.s32.totalorder %v1659_v24, 1  ;;  %vm380_vm12 = vcmp.eq.s32.totalorder %v1671_v33, %v1709_v58 }
 0x131   :  { %529 = vmax.xlane.f32.xlu0 %v1892_v34  ;;  %531 = vmax.xlane.f32.xlu1 %v1896_v54  ;;  %vm2644_vm10 = vmand %vm1992_vm2, %vm2734_vm7  ;;  %v1057_v19 = vsel %vm2642_vm5, 1.0, %v1369_v12  ;;  %vm379_vm5 = vcmp.eq.s32.totalorder %v1657_v22, %v1709_v58 }
 0x132   :  { %vm2019_vm6 = vmand %vm377_vm0, %vm457_vm3  ;;  %v1049_v38 = vsel %vm2644_vm10, 1.0, %v1369_v12  ;;  %vm2737_vm3 = vnez %v2706_v4  ;;  %vm2740_vm10 = vnez %v2708_v7 }
 0x133   :  { %v2736_v17 = vsel %vm2019_vm6, 4294967295, %v2735_v17  ;;  %vm2647_vm0 = vmand %vm2019_vm6, %vm2737_vm3  ;;  %vm381_vm3 = vcmp.eq.s32.totalorder %v1663_v26, %v1709_v58  ;;  %vm461_vm6 = vcmp.eq.s32.totalorder %v1667_v30, 1  ;;  %v2804_v30 = vld [vmem:[#allocation14_spill] sm:$0xff] }
 0x134   :  { %vm2042_vm4 = vmand %vm378_vm11, %vm458_vm8  ;;  %v1050_v28 = vsel %vm2647_vm0, 1.0, %v1369_v12  ;;  %vm2743_vm0 = vnez %v2714_v43 }
 0x135   :  { %547 = vmax.xlane.f32.xlu1 %v1908_v50  ;;  %v2739_v25 = vsel %vm2042_vm4, 4294967295, %v2738_v25  ;;  %vm2650_vm11 = vmand %vm2042_vm4, %vm2740_vm10  ;;  %vm463_vm10 = vcmp.eq.s32.totalorder %v1684_v45, 1  ;;  %vm383_vm4 = vcmp.eq.s32.totalorder %v1690_v49, %v1709_v58  ;;  %v2753_v49 = vmov 0 }
 0x136   :  { %vm2059_vm8 = vmand %vm379_vm5, %vm459_vm15  ;;  %v1051_v22 = vsel %vm2650_vm11, 1.0, %v1369_v12  ;;  %vm2746_vm11 = vnez %v2716_v23 }
 0x137   :  { %v2742_v48 = vsel %vm2059_vm8, 4294967295, %v2741_v48  ;;  %vm2653_vm15 = vmand %vm2059_vm8, %vm2743_vm0  ;;  %vm385_vm0 = vcmp.eq.s32.totalorder %v1707_v57, %v1709_v58  ;;  %vm465_vm8 = vcmp.eq.s32.totalorder %v1705_v56, 1  ;;  %v2147_v57 = vpop.permute.xlu0 %364 }
 0x138   :  { %vm2076_vm5 = vmand %vm380_vm12, %vm460_vm14  ;;  %v1052_v33 = vsel %vm2653_vm15, 1.0, %v1369_v12  ;;  %vm2749_vm15 = vnez %v2698_v63 }
 0x139   :  { %vm2656_vm12 = vmand %vm2076_vm5, %vm2746_vm11 }
 0x13a   :  { %vm2093_vm14 = vmand %vm381_vm3, %vm461_vm6  ;;  %v1053_v26 = vsel %vm2656_vm12, 1.0, %v1369_v12  ;;  %vm2752_vm12 = vnez %v2702_v0 }
 0x13b   :  { %vm2657_vm6 = vmand %vm2093_vm14, %vm2749_vm15 }
 0x13c   :  { %vm2110_vm3 = vmand %vm383_vm4, %vm463_vm10  ;;  %v1054_v45 = vsel %vm2657_vm6, 1.0, %v1369_v12  ;;  %vm2755_vm6 = vnez %v2710_v41 }
 0x13d   :  { %vm2660_vm10 = vmand %vm2110_vm3, %vm2752_vm12 }
 0x13e   :  { %vm2127_vm4 = vmand %vm385_vm0, %vm465_vm8  ;;  %v1056_v53 = vsel %vm2660_vm10, 1.0, %v1369_v12  ;;  %vm2757_vm8 = vnez %v2694_v59 }
 0x13f   :  { %v2754_v49 = vsel %vm2127_vm4, 4294967295, %v2753_v49  ;;  %vm2659_vm15 = vmand %vm2127_vm4, %vm2755_vm6 }
 0x140   :  { %v1058_v56 = vsel %vm2659_vm15, 1.0, %v1369_v12  ;;  %vm2756_vm0 = vmand %vm1930_vm1, %vm1724_vm9  ;;  %vm2760_vm9 = vnez %v2727_v14 }
 0x141   :  { %vm2758_vm15 = vmand %vm1934_vm13, %vm2757_vm8  ;;  %vm2763_vm13 = vnez %v2736_v17 }
 0x142   :  { %vm2759_vm10 = vmand %vm1992_vm2, %vm2734_vm7  ;;  %vm2761_vm7 = vnez %v2704_v35  ;;  %vm2764_vm2 = vnez %v2706_v4 }
 0x143   :  { %vm2762_vm1 = vmand %vm2760_vm9, %vm2761_vm7  ;;  %vm387_vm9 = vcmp.eq.s32.totalorder %v2147_v57, %v1709_v58  ;;  %vm467_vm7 = vcmp.eq.s32.totalorder %v2149_v47, 1 }
 0x146   :  { %451 = vperm.xlu1 %1222, %v404_v46  }
 0x147   :  { %367 = vperm.xlu0 %1223, %v1914_v29  }
 0x166   :  { %545 = vmax.xlane.f32.xlu0 %v1940_v8 }
 0x16a   :  { %709 = vadd.xlane.f32.xlu0 %v1046_v13  ;;  %711 = vadd.xlane.f32.xlu1 %v1047_v16 }
 0x16e   :  { %727 = vadd.xlane.f32.xlu0 %v1055_v20  ;;  %713 = vadd.xlane.f32.xlu1 %v1048_v32 }
 0x172   :  { %731 = vadd.xlane.f32.xlu0 %v1057_v19  ;;  %715 = vadd.xlane.f32.xlu1 %v1049_v38 }
 0x176   :  { %717 = vadd.xlane.f32.xlu1 %v1050_v28 }
 0x17a   :  { %719 = vadd.xlane.f32.xlu1 %v1051_v22 }
 0x17e   :  { %721 = vadd.xlane.f32.xlu1 %v1052_v33 }
 0x182   :  { %723 = vadd.xlane.f32.xlu1 %v1053_v26 }
 0x186   :  { %725 = vadd.xlane.f32.xlu1 %v1054_v45 }
 0x18a   :  { %729 = vadd.xlane.f32.xlu1 %v1056_v53 }
 0x18e   :  { %733 = vadd.xlane.f32.xlu1 %v1058_v56 }
 0x1a6   :  { %v520_v46 = vpop.xlane.xlu0 %519  ;;  %v536_v13 = vpop.xlane.xlu1 %535 }
 0x1a7   :  { %v550_v16 = vsub.f32 %v1743_v42, %v520_v46  ;;  %v2170_v21 = vsub.f32 %v1747_v51, %v536_v13 }
 0x1a9   :  { %v630_v20 = vsel %vm2756_vm0, %v550_v16, 0.0  ;;  %v567_v42 = vmul.f32 1.442695, %v550_v16  ;;  %v583_v1 = vmul.f32 1.442695, %v2170_v21  ;;  %vm2767_vm0 = vnez %v2708_v7 }
 0x1aa   :  { %v518_v32 = vpop.xlane.xlu0 %517  ;;  %647 = vadd.xlane.f32.xlu1 %v630_v20  ;;  %v524_v19 = vpop.xlane.xlu1 %523 }
 0x1ab   :  { %v549_v38 = vsub.f32 %v1781_v5, %v518_v32  ;;  %v552_v28 = vsub.f32 %v1785_v52, %v524_v19  ;;  %1224 = vpow2.f32 %v567_v42 }
 0x1ad   :  { %v629_v22 = vsel %vm2758_vm15, %v549_v38, 0.0  ;;  %v632_v2 = vsel %vm2759_vm10, %v552_v28, 0.0  ;;  %v565_v46 = vmul.f32 1.442695, %v549_v38  ;;  %vm2765_vm15 = vmand %vm2763_vm13, %vm2764_vm2  ;;  %vm2766_vm10 = vnez %v2739_v25 }
 0x1ae   :  { %v534_v33 = vpop.xlane.xlu0 %533  ;;  %645 = vadd.xlane.f32.xlu0 %v629_v22  ;;  %651 = vadd.xlane.f32.xlu1 %v632_v2  ;;  %v540_v5 = vpop.xlane.xlu1 %539  ;;  %vm2768_vm8 = vmand %vm2766_vm10, %vm2767_vm0  ;;  %v571_v4 = vmul.f32 1.442695, %v552_v28  ;;  %vm2770_vm13 = vnez %v2714_v43  ;;  %vm2775_vm0 = vnez %v2685_v55 }
 0x1af   :  { %v2173_v52 = vsub.f32 %v1792_v31, %v534_v33  ;;  %v2204_v25 = vsub.f32 %v1796_v40, %v540_v5  ;;  %vm2774_vm10 = vmand %vm2076_vm5, %vm2746_vm11  ;;  %vm2776_vm11 = vnez %v2725_v9  ;;  %vm2777_vm5 = vnez %v2692_v6  ;;  %v2780_v6 = vld [vmem:[#allocation23_spill] sm:$0xff] }
 0x1b1   :  { %v581_v59 = vmul.f32 1.442695, %v2173_v52 }
 0x1b2   :  { %v538_v18 = vpop.xlane.xlu0 %537  ;;  %v522_v62 = vpop.xlane.xlu1 %521 }
 0x1b3   :  { %1226 = vpow2.f32 %v581_v59  ;;  %v2178_v26 = vsub.f32 %v1818_v36, %v538_v18  ;;  %v551_v51 = vsub.f32 %v1822_v27, %v522_v62 }
 0x1b4   :  { %1228 = vpow2.f32 %v583_v1 }
 0x1b5   :  { %v585_v45 = vmul.f32 1.442695, %v2178_v26  ;;  %v631_v31 = vsel %vm2762_vm1, %v551_v51, 0.0  ;;  %v569_v28 = vmul.f32 1.442695, %v551_v51  ;;  %vm2769_vm1 = vnez %v2742_v48 }
 0x1b6   :  { %v526_v53 = vpop.xlane.xlu0 %525  ;;  %649 = vadd.xlane.f32.xlu0 %v631_v31  ;;  %v528_v56 = vpop.xlane.xlu1 %527  ;;  %vm2771_vm2 = vmand %vm2769_vm1, %vm2770_vm13  ;;  %vm2781_vm1 = vnez %v2780_v6 }
 0x1b7   :  { %1230 = vpow2.f32 %v585_v45  ;;  %v553_v13 = vsub.f32 %v1844_v10, %v526_v53  ;;  %v554_v36 = vsub.f32 %v1848_v60, %v528_v56  ;;  %v1225_v60 = vpop.eup %1224 }
 0x1b8   :  { %1232 = vpow2.f32 %v565_v46 }
 0x1b9   :  { %v633_v27 = vsel %vm2765_vm15, %v553_v13, 0.0  ;;  %v634_v35 = vsel %vm2768_vm8, %v554_v36, 0.0  ;;  %vm2217_vm15 = vmand %vm387_vm9, %vm467_vm7  ;;  %v575_v5 = vmul.f32 1.442695, %v554_v36  ;;  %v573_v43 = vmul.f32 1.442695, %v553_v13 }
 0x1ba   :  { %v542_v14 = vpop.xlane.xlu0 %541  ;;  %653 = vadd.xlane.f32.xlu0 %v633_v27  ;;  %655 = vadd.xlane.f32.xlu1 %v634_v35  ;;  %v544_v20 = vpop.xlane.xlu1 %543  ;;  %vm2661_vm8 = vmand %vm2217_vm15, %vm2775_vm0  ;;  %vm2779_vm7 = vnez %v2712_v15  ;;  %v2797_v15 = vld [vmem:[#allocation12_spill] sm:$0xff] }
 0x1bb   :  { %v2200_v10 = vsub.f32 %v1869_v44, %v542_v14  ;;  %v587_v44 = vmul.f32 1.442695, %v2204_v25  ;;  %v1060_v24 = vsel %vm2661_vm8, 1.0, %v1369_v12  ;;  %vm2778_vm9 = vmand %vm2776_vm11, %vm2777_vm5  ;;  %v562_v62 = vsub.f32 %v1873_v61, %v544_v20 }
 0x1bc   :  { %v638_v59 = vsel %vm2778_vm9, %v2170_v21, 0.0  ;;  %vm2662_vm13 = vmand %vm2781_vm1, %vm2779_vm7  ;;  %vm2784_vm5 = vnez %v2698_v63  ;;  %vm2786_vm8 = vnez %v2718_v37  ;;  %v2802_v37 = vld [vmem:[#allocation11_spill] sm:$0xff] }
 0x1bd   :  { %v1227_v16 = vpop.eup %1226  ;;  %v589_v17 = vmul.f32 1.442695, %v2200_v10  ;;  %v591_v45 = vmul.f32 1.442695, %v562_v62  ;;  %v1059_v61 = vsel %vm2662_vm13, 1.0, %v1369_v12  ;;  %vm2785_vm9 = vmand %vm2093_vm14, %vm2784_vm5 }
 0x1be   :  { %599 = vadd.xlane.f32.xlu0 %v1225_v60  ;;  %613 = vadd.xlane.f32.xlu1 %v1227_v16  ;;  %v1229_v7 = vpop.eup %1228  ;;  %v530_v19 = vpop.xlane.xlu0 %529  ;;  %vm2794_vm12 = vmand %vm2781_vm1, %vm2779_vm7 }
 0x1bf   :  { %1234 = vpow2.f32 %v589_v17  ;;  %v555_v22 = vsub.f32 %v1892_v34, %v530_v19  ;;  %v532_v2 = vpop.xlane.xlu1 %531  ;;  %v2772_v34 = vmov 0 }
 0x1c0   :  { %1236 = vpow2.f32 %v571_v4  ;;  %v556_v42 = vsub.f32 %v1896_v54, %v532_v2  ;;  %v2773_v34 = vsel %vm2217_vm15, 4294967295, %v2772_v34  ;;  %v2790_v4 = vld [vmem:[#allocation10_spill] sm:$0xff] }
 0x1c1   :  { %v1231_v32 = vpop.eup %1230  ;;  %1238 = vpow2.f32 %v587_v44  ;;  %v635_v33 = vsel %vm2771_vm2, %v555_v22, 0.0  ;;  %v577_v1 = vmul.f32 1.442695, %v555_v22 }
 0x1c2   :  { %615 = vadd.xlane.f32.xlu0 %v1229_v7  ;;  %617 = vadd.xlane.f32.xlu1 %v1231_v32  ;;  %v1233_v38 = vpop.eup %1232  ;;  %1240 = vpow2.f32 %v569_v28  ;;  %v636_v54 = vsel %vm2774_vm10, %v556_v42, 0.0  ;;  %v579_v23 = vmul.f32 1.442695, %v556_v42  ;;  %v2792_v7 = vld [vmem:[#allocation8_spill] sm:$0xff] }
 0x1c3   :  { %1242 = vpow2.f32 %v575_v5  ;;  %v548_v9 = vpop.xlane.xlu1 %547  ;;  %vm2793_vm6 = vcmp.ge.s32.totalorder %v2792_v7, 0 }
 0x1c4   :  { %1244 = vpow2.f32 %v573_v43  ;;  %v564_v21 = vsub.f32 %v1908_v50, %v548_v9  ;;  %v637_v50 = vsel %vm2785_vm9, %v2173_v52, 0.0 }
 0x1c5   :  { %1246 = vpow2.f32 %v579_v23 }
 0x1c6   :  { %597 = vadd.xlane.f32.xlu0 %v1233_v38  ;;  %1248 = vpow2.f32 %v577_v1  ;;  %v368_v56 = vpop.permute.xlu0 %367  ;;  %v595_v13 = vmul.f32 1.442695, %v564_v21 }
 0x1c7   :  { %1250 = vpow2.f32 %v591_v45  ;;  %v452_v46 = vpop.permute.xlu1 %451  ;;  %vm388_vm2 = vcmp.eq.s32.totalorder %v368_v56, %v1709_v58 }
 0x1c8   :  { %vm468_vm10 = vcmp.eq.s32.totalorder %v452_v46, 1  ;;  %1252 = vpow2.f32 %v595_v13  ;;  %v2820_v13 = vld [vmem:[#allocation22_spill] sm:$0xff] }
 0x1c9   :  { %v1235_v40 = vpop.eup %1234  ;;  %vm2255_vm11 = vmand %vm388_vm2, %vm468_vm10  ;;  %vm2787_vm2 = vnez %v2729_v11  ;;  %vm2788_vm10 = vnez %v2700_v3  ;;  %v642_v3 = vsel %vm2794_vm12, %v562_v62, 0.0  ;;  %vm2798_vm12 = vcmp.ge.s32.totalorder %v2797_v15, 0 }
 0x1ca   :  { %657 = vadd.xlane.f32.xlu0 %v635_v33  ;;  %621 = vadd.xlane.f32.xlu1 %v1235_v40  ;;  %v1237_v57 = vpop.eup %1236  ;;  %vm2663_vm13 = vmand %vm2255_vm11, %vm2786_vm8 }
 0x1cb   :  { %v1239_v48 = vpop.eup %1238  ;;  %v1061_v39 = vsel %vm2663_vm13, 1.0, %v1369_v12  ;;  %vm2789_vm5 = vmand %vm2787_vm2, %vm2788_vm10  ;;  %vm2791_vm13 = vcmp.ge.s32.totalorder %v2790_v4, 0 }
 0x1cc   :  { %v1241_v47 = vpop.eup %1240 }
 0x1cd   :  { %v1243_v18 = vpop.eup %1242 }
 0x1ce   :  { %603 = vadd.xlane.f32.xlu0 %v1237_v57  ;;  %659 = vadd.xlane.f32.xlu1 %v636_v54  ;;  %v1245_v51 = vpop.eup %1244 }
 0x1cf   :  { %v1247_v31 = vpop.eup %1246 }
 0x1d0   :  { %v1249_v53 = vpop.eup %1248 }
 0x1d1   :  { %v1251_v36 = vpop.eup %1250 }
 0x1d2   :  { %619 = vadd.xlane.f32.xlu0 %v1239_v48  ;;  %737 = vadd.xlane.f32.xlu1 %v1060_v24  ;;  %v1253_v52 = vpop.eup %1252 }
 0x1d6   :  { %601 = vadd.xlane.f32.xlu0 %v1241_v47  ;;  %663 = vadd.xlane.f32.xlu1 %v638_v59 }
 0x1da   :  { %607 = vadd.xlane.f32.xlu0 %v1243_v18 }
 0x1de   :  { %605 = vadd.xlane.f32.xlu0 %v1245_v51  ;;  %v2814_v51 = vld [vmem:[#allocation16_spill] sm:$0xff] }
 0x1e2   :  { %611 = vadd.xlane.f32.xlu0 %v1247_v31  ;;  %v2816_v31 = vld [vmem:[#allocation17_spill] sm:$0xff] }
 0x1e6   :  { %609 = vadd.xlane.f32.xlu0 %v1249_v53 }
 0x1ea   :  { %735 = vadd.xlane.f32.xlu0 %v1059_v61 }
 0x1ee   :  { %623 = vadd.xlane.f32.xlu0 %v1251_v36 }
 0x1f2   :  { %661 = vadd.xlane.f32.xlu0 %v637_v50 }
 0x1f3   :  { %v546_v58 = vpop.xlane.xlu0 %545 }
 0x1f4   :  { %v563_v35 = vsub.f32 %v1940_v8, %v546_v58  ;;  %v640_v8 = vsel %vm2789_vm5, %v2204_v25, 0.0  ;;  %v2795_v25 = vld [vmem:[#allocation9_spill] sm:$0xff] }
 0x1f5   :  { %vm2796_vm10 = vcmp.ge.s32.totalorder %v2795_v25, 0 }
 0x1f6   :  { %v593_v14 = vmul.f32 1.442695, %v563_v35  ;;  %739 = vadd.xlane.f32.xlu0 %v1061_v39 }
 0x1f7   :  { %v2276_v63 = vpop.xlane.xlu1 %711  ;;  %v2278_v60 = vpop.xlane.xlu0 %709 }
 0x1f8   :  { %1254 = vpow2.f32 %v593_v14  ;;  %vm741_vm14 = vcmp.gt.f32.partialorder %v2278_v60, 0.0  ;;  %vm742_vm9 = vcmp.gt.f32.partialorder %v2276_v63, 0.0 }
 0x1f9   :  { %vm869_vm0 = vmand %vm2791_vm13, %vm741_vm14  ;;  %vm933_vm13 = vcmask 7168  }
 0x1fa   :  { %627 = vadd.xlane.f32.xlu0 %v1253_v52  ;;  %vm870_vm4 = vmand %vm2793_vm6, %vm742_vm9  ;;  %v2308_v32 = vsel %vm869_vm0, 1.0, %v1369_v12  ;;  %vm2806_vm9 = vnez %v2754_v49 }
 0x1fb   :  { %v2280_v16 = vpop.xlane.xlu1 %713  ;;  %v2311_v19 = vsel %vm870_vm4, 1.0, %v1369_v12  ;;  %vm2800_vm4 = vnez %v2702_v0  ;;  %v974_v2 = vsel %vm933_vm13, %v2308_v32, 0.0  ;;  %v2355_v57 = vpop.xlane.xlu0 %727 }
 0x1fc   :  { %vm743_vm15 = vcmp.gt.f32.partialorder %v2280_v16, 0.0  ;;  %vm2801_vm0 = vmand %vm2110_vm3, %vm2800_vm4  ;;  %v975_v28 = vsel %vm933_vm13, %v2311_v19, 0.0  ;;  %vm2805_vm3 = vcmp.ge.s32.totalorder %v2804_v30, 0 }
 0x1fd   :  { %vm871_vm5 = vmand %vm2796_vm10, %vm743_vm15  ;;  %v639_v22 = vsel %vm2801_vm0, %v2178_v26, 0.0  ;;  %v976_v26 = vadd.f32 %v975_v28, %v974_v2  ;;  %vm750_vm0 = vcmp.gt.f32.partialorder %v2355_v57, 0.0 }
 0x1fe   :  { %667 = vadd.xlane.f32.xlu0 %v640_v8  ;;  %vm2799_vm15 = vmand %vm2255_vm11, %vm2786_vm8  ;;  %v2322_v38 = vsel %vm871_vm5, 1.0, %v1369_v12  ;;  %vm2803_vm8 = vcmp.ge.s32.totalorder %v2802_v37, 0 }
 0x1ff   :  { %v2290_v17 = vpop.xlane.xlu1 %715  ;;  %v644_v44 = vsel %vm2799_vm15, %v564_v21, 0.0  ;;  %v977_v0 = vsel %vm933_vm13, %v2322_v38, 0.0  ;;  %vm2812_vm15 = vnez %v2685_v55  ;;  %v2383_v62 = vpop.xlane.xlu0 %731  ;;  %v2818_v21 = vld [vmem:[#allocation15_spill] sm:$0xff] }
 0x200   :  { %vm744_vm2 = vcmp.gt.f32.partialorder %v2290_v17, 0.0  ;;  %v978_v48 = vadd.f32 %v977_v0, %v976_v26 }
 0x201   :  { %vm872_vm7 = vmand %vm2798_vm12, %vm744_vm2  ;;  %vm2807_vm2 = vnez %v2710_v41  ;;  %v2809_v41 = vld [vmem:[#allocation13_spill] sm:$0xff] }
 0x202   :  { %v1255_v11 = vpop.eup %1254  ;;  %671 = vadd.xlane.f32.xlu0 %v642_v3  ;;  %v2339_v42 = vsel %vm872_vm7, 1.0, %v1369_v12  ;;  %vm2808_vm10 = vmand %vm2806_vm9, %vm2807_vm2  ;;  %vm2811_vm7 = vnez %v2773_v34  ;;  %vm752_vm9 = vcmp.gt.f32.partialorder %v2383_v62, 0.0 }
 0x203   :  { %625 = vadd.xlane.f32.xlu1 %v1255_v11  ;;  %v2305_v20 = vpop.xlane.xlu1 %717  ;;  %v641_v5 = vsel %vm2808_vm10, %v2200_v10, 0.0  ;;  %v979_v54 = vsel %vm933_vm13, %v2339_v42, 0.0  ;;  %vm2813_vm4 = vmand %vm2811_vm7, %vm2812_vm15  ;;  %vm2819_vm10 = vcmp.ge.s32.totalorder %v2818_v21, 0  ;;  %v757_v11 = vmax.f32 %v2278_v60, 1.0 }
 0x204   :  { %vm745_vm6 = vcmp.gt.f32.partialorder %v2305_v20, 0.0  ;;  %v980_v10 = vadd.f32 %v979_v54, %v978_v48  ;;  %v643_v47 = vsel %vm2813_vm4, %v563_v35, 0.0  ;;  %v2822_v35 = vld [vmem:[#allocation19_spill] sm:$0xff]  ;;  %v758_v60 = vmax.f32 %v2276_v63, 1.0 }
 0x205   :  { %vm873_vm1 = vmand %vm2803_vm8, %vm745_vm6  ;;  %vm2810_vm6 = vcmp.ge.s32.totalorder %v2809_v41, 0  ;;  %vm2823_vm15 = vcmp.ge.s32.totalorder %v2822_v35, 0  ;;  %1256 = vrcp.f32 %v757_v11  ;;  %v766_v63 = vmax.f32 %v2355_v57, 1.0 }
 0x206   :  { %675 = vadd.xlane.f32.xlu0 %v644_v44  ;;  %v2347_v33 = vsel %vm873_vm1, 1.0, %v1369_v12  ;;  %vm2815_vm1 = vcmp.ge.s32.totalorder %v2814_v51, 0 }
 0x207   :  { %665 = vadd.xlane.f32.xlu1 %v639_v22  ;;  %v2336_v40 = vpop.xlane.xlu1 %719  ;;  %v981_v49 = vsel %vm933_vm13, %v2347_v33, 0.0 }
 0x208   :  { %vm746_vm11 = vcmp.gt.f32.partialorder %v2336_v40, 0.0  ;;  %v982_v18 = vadd.f32 %v981_v49, %v980_v10  ;;  %v759_v10 = vmax.f32 %v2280_v16, 1.0  ;;  %v761_v16 = vmax.f32 %v2305_v20, 1.0 }
 0x209   :  { %vm874_vm14 = vmand %vm2805_vm3, %vm746_vm11  ;;  %vm2817_vm3 = vcmp.ge.s32.totalorder %v2816_v31, 0 }
 0x20a   :  { %v2362_v24 = vsel %vm874_vm14, 1.0, %v1369_v12  ;;  %vm878_vm14 = vmand %vm2817_vm3, %vm750_vm0 }
 0x20b   :  { %669 = vadd.xlane.f32.xlu1 %v641_v5  ;;  %v2359_v43 = vpop.xlane.xlu1 %721  ;;  %v983_v59 = vsel %vm933_vm13, %v2362_v24, 0.0  ;;  %v2403_v56 = vsel %vm878_vm14, 1.0, %v1369_v12 }
 0x20c   :  { %vm747_vm5 = vcmp.gt.f32.partialorder %v2359_v43, 0.0  ;;  %v984_v55 = vadd.f32 %v983_v59, %v982_v18  ;;  %v991_v58 = vsel %vm933_vm13, %v2403_v56, 0.0 }
 0x20d   :  { %vm875_vm12 = vmand %vm2810_vm6, %vm747_vm5  ;;  %vm2821_vm6 = vcmp.ge.s32.totalorder %v2820_v13, 0 }
 0x20e   :  { %v2370_v23 = vsel %vm875_vm12, 1.0, %v1369_v12  ;;  %vm880_vm12 = vmand %vm2821_vm6, %vm752_vm9  ;;  %vm2830_vm6 = vcmp.ge.s32.totalorder %v1914_v29, 0 }
 0x20f   :  { %673 = vadd.xlane.f32.xlu1 %v643_v47  ;;  %v2379_v1 = vpop.xlane.xlu1 %723  ;;  %v985_v34 = vsel %vm933_vm13, %v2370_v23, 0.0  ;;  %v2420_v39 = vsel %vm880_vm12, 1.0, %v1369_v12  ;;  %v1257_v25 = vpop.eup %1256  ;;  %v760_v47 = vmax.f32 %v2290_v17, 1.0  ;;  %v762_v17 = vmax.f32 %v2336_v40, 1.0 }
 0x210   :  { %vm748_vm8 = vcmp.gt.f32.partialorder %v2379_v1, 0.0  ;;  %v986_v6 = vadd.f32 %v985_v34, %v984_v55  ;;  %v995_v7 = vsel %vm933_vm13, %v2420_v39, 0.0  ;;  %v764_v57 = vmax.f32 %v2379_v1, 1.0 }
 0x211   :  { %vm876_vm11 = vmand %vm2815_vm1, %vm748_vm8 }
 0x212   :  { %v2390_v45 = vsel %vm876_vm11, 1.0, %v1369_v12 }
 0x213   :  { %v987_v9 = vsel %vm933_vm13, %v2390_v45, 0.0  ;;  %v2396_v53 = vpop.xlane.xlu1 %725 }
 0x214   :  { %vm749_vm2 = vcmp.gt.f32.partialorder %v2396_v53, 0.0  ;;  %v988_v46 = vadd.f32 %v987_v9, %v986_v6 }
 0x215   :  { %vm877_vm5 = vmand %vm2819_vm10, %vm749_vm2 }
 0x216   :  { %v2406_v61 = vsel %vm877_vm5, 1.0, %v1369_v12 }
 0x217   :  { %v989_v36 = vsel %vm933_vm13, %v2406_v61, 0.0  ;;  %v2412_v27 = vpop.xlane.xlu1 %729 }
 0x218   :  { %v990_v50 = vadd.f32 %v989_v36, %v988_v46  ;;  %vm751_vm7 = vcmp.gt.f32.partialorder %v2412_v27, 0.0 }
 0x219   :  { %vm879_vm4 = vmand %vm2823_vm15, %vm751_vm7 }
 0x21a   :  { %v992_v14 = vadd.f32 %v991_v58, %v990_v50  ;;  %v2423_v52 = vsel %vm879_vm4, 1.0, %v1369_v12  ;;  %v763_v50 = vmax.f32 %v2359_v43, 1.0 }
 0x21b   :  { %v993_v8 = vsel %vm933_vm13, %v2423_v52, 0.0  ;;  %v2434_v28 = vpop.xlane.xlu1 %733 }
 0x21c   :  { %v994_v4 = vadd.f32 %v993_v8, %v992_v14  ;;  %vm753_vm0 = vcmp.gt.f32.partialorder %v2434_v28, 0.0 }
 0x21e   :  { %v2429_v3 = vadd.f32 %v995_v7, %v994_v4  ;;  %v765_v4 = vmax.f32 %v2396_v53, 1.0 }
 0x237   :  { %v648_v0 = vpop.xlane.xlu1 %647 }
 0x23b   :  { %v646_v15 = vpop.xlane.xlu0 %645  ;;  %v652_v26 = vpop.xlane.xlu1 %651 }
 0x23c   :  { %v774_v44 = vmul.f32 %v1257_v25, %v646_v15 }
 0x243   :  { %v650_v22 = vpop.xlane.xlu0 %649 }
 0x247   :  { %v2432_v2 = vpop.xlane.xlu0 %653  ;;  %v2438_v54 = vpop.xlane.xlu1 %655 }
 0x24b   :  { %v600_v37 = vpop.xlane.xlu0 %599  ;;  %v614_v41 = vpop.xlane.xlu1 %613 }
 0x24f   :  { %v2436_v30 = vpop.xlane.xlu0 %615  ;;  %v2447_v51 = vpop.xlane.xlu1 %617 }
 0x253   :  { %v598_v5 = vpop.xlane.xlu0 %597 }
 0x254   :  { %1258 = vlog2.f32 %v598_v5 }
 0x255   :  { %1260 = vlog2.f32 %v600_v37 }
 0x256   :  { %1262 = vrcp.f32 %v758_v60 }
 0x257   :  { %v2440_v48 = vpop.xlane.xlu0 %657  ;;  %v2452_v13 = vpop.xlane.xlu1 %621 }
 0x25b   :  { %v604_v49 = vpop.xlane.xlu0 %603  ;;  %v660_v25 = vpop.xlane.xlu1 %659 }
 0x25c   :  { %1264 = vlog2.f32 %v604_v49 }
 0x25d   :  { %1266 = vrcp.f32 %v759_v10 }
 0x25e   :  { %v1259_v18 = vpop.eup %1258  ;;  %1268 = vrcp.f32 %v760_v47 }
 0x25f   :  { %v2445_v59 = vpop.xlane.xlu0 %619  ;;  %v1261_v34 = vpop.eup %1260  ;;  %v806_v55 = vmul.f32 0.6931472, %v1259_v18 }
 0x260   :  { %v808_v9 = vmul.f32 0.6931472, %v1261_v34  ;;  %v1263_v6 = vpop.eup %1262 }
 0x261   :  { %v776_v21 = vmul.f32 %v1263_v6, %v648_v0  ;;  %v837_v46 = vsub.f32 %v774_v44, %v806_v55  ;;  %v2824_v55 = vld [vmem:[#allocation18_spill] sm:$0xff] }
 0x262   :  { %vm2825_vm8 = vcmp.ge.s32.totalorder %v2824_v55, 0 }
 0x263   :  { %v602_v31 = vpop.xlane.xlu0 %601  ;;  %v838_v58 = vsub.f32 %v776_v21, %v808_v9  ;;  %v853_v14 = vmul.f32 -1.0, %v837_v46  ;;  %vm881_vm1 = vmand %vm2825_vm8, %vm753_vm0 }
 0x264   :  { %1270 = vlog2.f32 %v602_v31 }
 0x265   :  { %v854_v7 = vmul.f32 -1.0, %v838_v58  ;;  %v917_v37 = vmul.f32 %v2308_v32, %v853_v14  ;;  %v2474_v58 = vsel %vm881_vm1, 1.0, %v1369_v12 }
 0x266   :  { %v1265_v35 = vpop.eup %1264 }
 0x267   :  { %v608_v36 = vpop.xlane.xlu0 %607  ;;  %v1267_v20 = vpop.eup %1266  ;;  %v812_v11 = vmul.f32 0.6931472, %v1265_v35  ;;  %v918_v5 = vmul.f32 %v2311_v19, %v854_v7 }
 0x268   :  { %1272 = vlog2.f32 %v608_v36  ;;  %v1269_v40 = vpop.eup %1268  ;;  %v778_v44 = vmul.f32 %v1267_v20, %v650_v22  ;;  %v2462_v22 = vpop.xlane.xlu1 %737 }
 0x269   :  { %1274 = vrcp.f32 %v766_v63  ;;  %v780_v43 = vmul.f32 %v1269_v40, %v652_v26  ;;  %v934_v26 = vsel %vm933_vm13, %v917_v37, 0.0  ;;  %v935_v19 = vsel %vm933_vm13, %v918_v5, 0.0 }
 0x26a   :  { %1276 = vrcp.f32 %v761_v16  ;;  %vm755_vm9 = vcmp.gt.f32.partialorder %v2462_v22, 0.0  ;;  %v997_v40 = vsel %vm933_vm13, %v2474_v58, 0.0 }
 0x26b   :  { %1278 = vrcp.f32 %v762_v17  ;;  %v606_v8 = vpop.xlane.xlu0 %605  ;;  %v840_v60 = vsub.f32 %v780_v43, %v812_v11 }
 0x26c   :  { %1280 = vlog2.f32 %v606_v8 }
 0x26d   :  { %1282 = vrcp.f32 %v763_v50  ;;  %v856_v31 = vmul.f32 -1.0, %v840_v60 }
 0x26e   :  { %v1271_v15 = vpop.eup %1270  ;;  %1284 = vrcp.f32 %v764_v57  ;;  %v664_v57 = vpop.xlane.xlu1 %663 }
 0x26f   :  { %v810_v0 = vmul.f32 0.6931472, %v1271_v15  ;;  %v612_v1 = vpop.xlane.xlu0 %611 }
 0x270   :  { %1286 = vlog2.f32 %v612_v1  ;;  %v2828_v1 = vld [vmem:[#allocation21_spill] sm:$0xff] }
 0x271   :  { %1288 = vrcp.f32 %v765_v4  ;;  %v839_v49 = vsub.f32 %v778_v44, %v810_v0  ;;  %vm2829_vm2 = vcmp.ge.s32.totalorder %v2828_v1, 0 }
 0x272   :  { %v1273_v10 = vpop.eup %1272  ;;  %1290 = vlog2.f32 %v2436_v30  ;;  %vm883_vm10 = vmand %vm2829_vm2, %vm755_vm9 }
 0x273   :  { %v1275_v53 = vpop.eup %1274  ;;  %1292 = vlog2.f32 %v614_v41  ;;  %v855_v32 = vmul.f32 -1.0, %v839_v49  ;;  %v610_v47 = vpop.xlane.xlu0 %609  ;;  %v816_v30 = vmul.f32 0.6931472, %v1273_v10  ;;  %v936_v41 = vadd.f32 %v935_v19, %v934_v26 }
 0x274   :  { %v1277_v18 = vpop.eup %1276  ;;  %1294 = vlog2.f32 %v610_v47  ;;  %v792_v44 = vmul.f32 %v1275_v53, %v664_v57  ;;  %v998_v26 = vadd.f32 %v997_v40, %v2429_v3  ;;  %v769_v40 = vmax.f32 %v2434_v28, 1.0 }
 0x275   :  { %v1279_v34 = vpop.eup %1278  ;;  %v919_v63 = vmul.f32 %v2322_v38, %v855_v32  ;;  %v782_v16 = vmul.f32 %v1277_v18, %v2432_v2  ;;  %v920_v38 = vmul.f32 %v2339_v42, %v856_v31  ;;  %v2826_v2 = vld [vmem:[#allocation20_spill] sm:$0xff] }
 0x276   :  { %v1281_v9 = vpop.eup %1280  ;;  %v784_v17 = vmul.f32 %v1279_v34, %v2438_v54  ;;  %vm2827_vm3 = vcmp.ge.s32.totalorder %v2826_v2, 0 }
 0x277   :  { %v1283_v6 = vpop.eup %1282  ;;  %v937_v21 = vsel %vm933_vm13, %v919_v63, 0.0  ;;  %v814_v46 = vmul.f32 0.6931472, %v1281_v9  ;;  %v2471_v36 = vpop.xlane.xlu0 %735  ;;  %v939_v0 = vsel %vm933_vm13, %v920_v38, 0.0 }
 0x278   :  { %v1285_v50 = vpop.eup %1284  ;;  %v938_v35 = vadd.f32 %v937_v21, %v936_v41  ;;  %vm754_vm11 = vcmp.gt.f32.partialorder %v2471_v36, 0.0  ;;  %v842_v14 = vsub.f32 %v784_v17, %v816_v30  ;;  %v786_v53 = vmul.f32 %v1283_v6, %v2440_v48 }
 0x279   :  { %v841_v8 = vsub.f32 %v782_v16, %v814_v46  ;;  %vm882_vm14 = vmand %vm2827_vm3, %vm754_vm11  ;;  %v788_v4 = vmul.f32 %v1285_v50, %v660_v25  ;;  %v768_v25 = vmax.f32 %v2383_v62, 1.0  ;;  %v770_v17 = vmax.f32 %v2471_v36, 1.0 }
 0x27a   :  { %v1287_v54 = vpop.eup %1286  ;;  %v2484_v42 = vsel %vm882_vm14, 1.0, %v1369_v12  ;;  %v858_v5 = vmul.f32 -1.0, %v842_v14  ;;  %v940_v32 = vadd.f32 %v939_v0, %v938_v35  ;;  %v767_v46 = vmax.f32 %v2412_v27, 1.0 }
 0x27b   :  { %v1289_v20 = vpop.eup %1288  ;;  %v857_v7 = vmul.f32 -1.0, %v841_v8  ;;  %v820_v11 = vmul.f32 0.6931472, %v1287_v54  ;;  %v624_v15 = vpop.xlane.xlu0 %623  ;;  %v999_v55 = vsel %vm933_vm13, %v2484_v42, 0.0  ;;  %1296 = vrcp.f32 %v768_v25 }
 0x27c   :  { %v1291_v43 = vpop.eup %1290  ;;  %v922_v3 = vmul.f32 %v2362_v24, %v858_v5  ;;  %v1000_v41 = vadd.f32 %v999_v55, %v998_v26  ;;  %1298 = vlog2.f32 %v2445_v59 }
 0x27d   :  { %v1293_v37 = vpop.eup %1292  ;;  %v921_v60 = vmul.f32 %v2347_v33, %v857_v7  ;;  %v844_v49 = vsub.f32 %v788_v4, %v820_v11  ;;  %v824_v47 = vmul.f32 0.6931472, %v1291_v43  ;;  %v2497_v33 = vsel %vm883_vm10, 1.0, %v1369_v12 }
 0x27e   :  { %v1295_v10 = vpop.eup %1294  ;;  %v822_v31 = vmul.f32 0.6931472, %v1293_v37  ;;  %v1001_v50 = vsel %vm933_vm13, %v2497_v33, 0.0  ;;  %v943_v24 = vsel %vm933_vm13, %v922_v3, 0.0  ;;  %1300 = vlog2.f32 %v2447_v51 }
 0x27f   :  { %v941_v18 = vsel %vm933_vm13, %v921_v60, 0.0  ;;  %v818_v34 = vmul.f32 0.6931472, %v1295_v10  ;;  %v662_v19 = vpop.xlane.xlu0 %661  ;;  %v846_v62 = vsub.f32 %v792_v44, %v824_v47  ;;  %v860_v9 = vmul.f32 -1.0, %v844_v49 }
 0x280   :  { %v942_v63 = vadd.f32 %v941_v18, %v940_v32  ;;  %v790_v30 = vmul.f32 %v1289_v20, %v662_v19  ;;  %v1002_v36 = vadd.f32 %v1001_v50, %v1000_v41  ;;  %1302 = vrcp.f32 %v770_v17 }
 0x281   :  { %v843_v48 = vsub.f32 %v786_v53, %v818_v34  ;;  %v862_v38 = vmul.f32 -1.0, %v846_v62  ;;  %v924_v57 = vmul.f32 %v2390_v45, %v860_v9  ;;  %1304 = vlog2.f32 %v624_v15 }
 0x282   :  { %v845_v6 = vsub.f32 %v790_v30, %v822_v31  ;;  %v944_v59 = vadd.f32 %v943_v24, %v942_v63  ;;  %1306 = vrcp.f32 %v767_v46 }
 0x283   :  { %v859_v16 = vmul.f32 -1.0, %v843_v48  ;;  %v740_v21 = vpop.xlane.xlu0 %739  ;;  %v926_v51 = vmul.f32 %v2403_v56, %v862_v38  ;;  %v771_v56 = vmax.f32 %v2462_v22, 1.0 }
 0x284   :  { %v861_v35 = vmul.f32 -1.0, %v845_v6  ;;  %vm756_vm5 = vcmp.gt.f32.partialorder %v740_v21, 0.0  ;;  %v772_v29 = vmax.f32 %v740_v21, 1.0 }
 0x285   :  { %v923_v14 = vmul.f32 %v2370_v23, %v859_v16  ;;  %vm884_vm12 = vmand %vm2830_vm6, %vm756_vm5  ;;  %v1297_v11 = vpop.eup %1296  ;;  %v951_v44 = vsel %vm933_vm13, %v926_v51, 0.0 }
 0x286   :  { %v2512_v27 = vsel %vm884_vm12, 1.0, %v1369_v12  ;;  %v925_v2 = vmul.f32 %v2406_v61, %v861_v35  ;;  %v947_v12 = vsel %vm933_vm13, %v924_v57, 0.0  ;;  %v1299_v15 = vpop.eup %1298 }
 0x287   :  { %v945_v8 = vsel %vm933_vm13, %v923_v14, 0.0  ;;  %v1003_v45 = vsel %vm933_vm13, %v2512_v27, 0.0  ;;  %v628_v54 = vpop.xlane.xlu0 %627  ;;  %v828_v5 = vmul.f32 0.6931472, %v1299_v15 }
 0x288   :  { %v946_v23 = vadd.f32 %v945_v8, %v944_v59  ;;  %v1004_v20 = vadd.f32 %v1003_v45, %v1002_v36  ;;  %1308 = vlog2.f32 %v628_v54  ;;  %v949_v61 = vsel %vm933_vm13, %v925_v2, 0.0  ;;  %v1301_v1 = vpop.eup %1300 }
 0x289   :  { %1310 = vlog2.f32 %v2452_v13  ;;  %v826_v34 = vmul.f32 0.6931472, %v1301_v1 }
 0x28a   :  { %v948_v4 = vadd.f32 %v947_v12, %v946_v23  ;;  %1005 = vadd.xlane.f32.xlu0 %v1004_v20  ;;  %1312 = vrcp.f32 %v772_v29  ;;  %v1303_v49 = vpop.eup %1302 }
 0x28b   :  { %v668_v7 = vpop.xlane.xlu0 %667  ;;  %1314 = vrcp.f32 %v769_v40  ;;  %v1305_v13 = vpop.eup %1304 }
 0x28c   :  { %v950_v43 = vadd.f32 %v949_v61, %v948_v4  ;;  %v796_v37 = vmul.f32 %v1297_v11, %v668_v7  ;;  %v1307_v25 = vpop.eup %1306  ;;  %v832_v55 = vmul.f32 0.6931472, %v1305_v13 }
 0x28e   :  { %v952_v0 = vadd.f32 %v951_v44, %v950_v43  ;;  %v848_v10 = vsub.f32 %v796_v37, %v828_v5 }
 0x28f   :  { %v672_v28 = vpop.xlane.xlu0 %671 }
 0x290   :  { %v626_v60 = vpop.xlane.xlu1 %625  ;;  %v800_v26 = vmul.f32 %v1303_v49, %v672_v28  ;;  %v864_v31 = vmul.f32 -1.0, %v848_v10 }
 0x291   :  { %1316 = vlog2.f32 %v626_v60 }
 0x292   :  { %1318 = vrcp.f32 %v771_v56  ;;  %v1309_v53 = vpop.eup %1308  ;;  %v850_v30 = vsub.f32 %v800_v26, %v832_v55  ;;  %v928_v17 = vmul.f32 %v2420_v39, %v864_v31 }
 0x293   :  { %v676_v32 = vpop.xlane.xlu0 %675  ;;  %v1311_v18 = vpop.eup %1310  ;;  %v836_v63 = vmul.f32 0.6931472, %v1309_v53 }
 0x294   :  { %v666_v47 = vpop.xlane.xlu1 %665  ;;  %v1313_v19 = vpop.eup %1312  ;;  %v830_v41 = vmul.f32 0.6931472, %v1311_v18  ;;  %v866_v46 = vmul.f32 -1.0, %v850_v30  ;;  %v955_v2 = vsel %vm933_vm13, %v928_v17, 0.0 }
 0x295   :  { %v794_v22 = vmul.f32 %v1307_v25, %v666_v47  ;;  %v804_v62 = vmul.f32 %v1313_v19, %v676_v32  ;;  %v1315_v9 = vpop.eup %1314 }
 0x296   :  { %v930_v54 = vmul.f32 %v2484_v42, %v866_v46 }
 0x297   :  { %v847_v3 = vsub.f32 %v794_v22, %v826_v34  ;;  %v852_v50 = vsub.f32 %v804_v62, %v836_v63 }
 0x298   :  { %v670_v48 = vpop.xlane.xlu1 %669  ;;  %v959_v61 = vsel %vm933_vm13, %v930_v54, 0.0 }
 0x299   :  { %v863_v6 = vmul.f32 -1.0, %v847_v3  ;;  %v798_v16 = vmul.f32 %v1315_v9, %v670_v48  ;;  %v868_v23 = vmul.f32 -1.0, %v852_v50 }
 0x29b   :  { %v1317_v21 = vpop.eup %1316  ;;  %v927_v35 = vmul.f32 %v2423_v52, %v863_v6  ;;  %v849_v38 = vsub.f32 %v798_v16, %v830_v41  ;;  %v932_v4 = vmul.f32 %v2512_v27, %v868_v23 }
 0x29c   :  { %v1319_v24 = vpop.eup %1318  ;;  %v834_v57 = vmul.f32 0.6931472, %v1317_v21  ;;  %v674_v14 = vpop.xlane.xlu1 %673 }
 0x29d   :  { %v953_v59 = vsel %vm933_vm13, %v927_v35, 0.0  ;;  %v865_v36 = vmul.f32 -1.0, %v849_v38  ;;  %v802_v8 = vmul.f32 %v1319_v24, %v674_v14  ;;  %v963_v42 = vsel %vm933_vm13, %v932_v4, 0.0 }
 0x29e   :  { %v954_v45 = vadd.f32 %v953_v59, %v952_v0 }
 0x29f   :  { %v929_v39 = vmul.f32 %v2474_v58, %v865_v36  ;;  %v851_v29 = vsub.f32 %v802_v8, %v834_v57 }
 0x2a0   :  { %v956_v20 = vadd.f32 %v955_v2, %v954_v45 }
 0x2a1   :  { %v957_v52 = vsel %vm933_vm13, %v929_v39, 0.0  ;;  %v867_v51 = vmul.f32 -1.0, %v851_v29 }
 0x2a2   :  { %v958_v12 = vadd.f32 %v957_v52, %v956_v20 }
 0x2a3   :  { %v931_v40 = vmul.f32 %v2497_v33, %v867_v51 }
 0x2a4   :  { %v960_v7 = vadd.f32 %v959_v61, %v958_v12 }
 0x2a5   :  { %v961_v11 = vsel %vm933_vm13, %v931_v40, 0.0 }
 0x2a6   :  { %v962_v43 = vadd.f32 %v961_v11, %v960_v7 }
 0x2a8   :  { %v964_v15 = vadd.f32 %v963_v42, %v962_v43 }
 0x2aa   :  { %965 = vadd.xlane.f32.xlu1 %v964_v15 }
 0x317   :  { %v1006_v58 = vpop.xlane.xlu0 %1005 }
 0x318   :  { %v1007_v44 = vrot.slane %v1006_v58, 4 }
 0x31a   :  { %v1008_v56 = vadd.f32 %v1007_v44, %v1006_v58 }
 0x31c   :  { %v1009_v37 = vrot.slane %v1008_v56, 2 }
 0x31e   :  { %v1010_v33 = vadd.f32 %v1009_v37, %v1008_v56 }
 0x320   :  { %v1011_v60 = vrot.slane %v1010_v33, 1 }
 0x322   :  { %v1012_v10 = vadd.f32 %v1011_v60, %v1010_v33 }
 0x337   :  { %v966_v0 = vpop.xlane.xlu1 %965 }
 0x338   :  { %v967_v28 = vrot.slane %v966_v0, 4 }
 0x33a   :  { %v968_v1 = vadd.f32 %v967_v28, %v966_v0 }
 0x33c   :  { %v969_v5 = vrot.slane %v968_v1, 2 }
 0x33e   :  { %v970_v27 = vadd.f32 %v969_v5, %v968_v1 }
 0x340   :  { %v971_v49 = vrot.slane %v970_v27, 1 }
 0x342   :  { %v972_v13 = vadd.f32 %v971_v49, %v970_v27 }
 0x344   :  { %1214 = vpush %v972_v13 }
 0x345   :  { %1216 = vpush %v1012_v10 }
 0x375   :  { %s1215_s30 = spop %1214 }
 0x376   :  { %v1014_v25 = vstv %s1215_s30  ;;  %s1217_s5 = spop %1216 }
 0x377   :  { %1015 = vst [vmem:[#allocation2] sm:$0xff] %v1014_v25  ;;  %v1016_v26 = vstv %s1217_s5 }
 0x378   :  { %1017 = vst [vmem:[#allocation4] sm:$0xff] %v1016_v26 }
 0x379   :  { %1331 = shalt.err (!%p1328_p4)
}
 0x37a   :  { %s1332_s9 = scalar_lea.hbm %s2571_s3, 128 }
 0x37b   :  { %p1333_p5 = scmp.ne.s32.totalorder %s2571_s3, %s1332_s9  ;;  %p1336_p6 = scmp.lt.u32.totalorder %s1332_s9, %s2571_s3 }
 0x37d   :  { %p1338_p7 = pnand %p1336_p6, %p1333_p5 }
 0x37f   :  { %1341 = shalt.err (!%p1338_p7)
}
 0x380   :  { %1027 = dma.vmem_to_hbm [thread:$0]  %s1025_s27, 128, %s2571_s3, [#allocation3]  }
 0x381   :  { %s1342_s16 = scalar_lea.vmem %s2537_s29, 128  ;;  %p1347_p9 = scmp.lt.s32.totalorder %s2537_s29, %s2537_s29 }
 0x382   :  { %p1343_p8 = scmp.ne.s32.totalorder %s2537_s29, %s1342_s16  ;;  %p1348_p10 = scmp.lt.s32.totalorder %s1342_s16, %s1342_s16 }
 0x384   :  { %p1349_p11 = por %p1348_p10, %p1347_p9 }
 0x386   :  { %p1350_p12 = pnand %p1349_p11, %p1343_p8 }
 0x388   :  { %1353 = shalt.err (!%p1350_p12)
}
 0x389   :  { %s1354_s19 = scalar_lea.hbm %s2572_s4, 128 }
 0x38a   :  { %p1355_p13 = scmp.ne.s32.totalorder %s2572_s4, %s1354_s19  ;;  %p1358_p0 = scmp.lt.u32.totalorder %s1354_s19, %s2572_s4 }
 0x38c   :  { %p1360_p1 = pnand %p1358_p0, %p1355_p13 }
 0x38e   :  { %1363 = shalt.err (!%p1360_p1)
}
 0x38f   :  { %1037 = dma.vmem_to_hbm [thread:$0]  %s2537_s29, 128, %s2572_s4, [#allocation5]  }
 0x390   :  { %1364 = dma.done.wait [#allocation3], 128  }
 0x391   :  { %1365 = vsyncadd [#allocation3], 4294967168 }
 0x392   :  { %1366 = dma.done.wait [#allocation5], 128  }
 0x393   :  { %1367 = vsyncadd [#allocation5], 4294967168 }
 0x394   :  { %1044 = vsyncpa [#allocation3], 1 }
 0x395   :  { %1045 = vsyncpa [#allocation5], 1 }

</bundles_post_ra>
